<compile_context>
chip_gen: v6e
topology: v6e:2x2x1
jax: 0.10.0
libtpu: 0.0.40
codegen_flags: <defaults>
</compile_context>

<pallas_src>
import jax
import jax.numpy as jnp
from jax import lax
from jax.experimental import pallas as pl
from jax.experimental.pallas import tpu as pltpu

EPS = 2e-5  # matches nn.BatchNorm2d(eps=2e-05)


def _round_up8(c):
    return ((c + 7) // 8) * 8


def _make_kernel(H, W):
    def kernel(x_ref, hi_ref, wi_ref, g1_ref, b1_ref, w1_ref, g2_ref, b2_ref,
               al_ref, w2_ref, g3_ref, b3_ref, o_ref):
        x = x_ref[...]                        # (C_pad, NHW) f32
        nhw = x.shape[1]
        hi = hi_ref[...]                      # (1, NHW) int32: h coordinate of each lane
        wi = wi_ref[...]                      # (1, NHW) int32: w coordinate of each lane

        # Hoisted tap descriptors (lane roll amount, validity mask), shared by both convs.
        taps_meta = []
        for oy in (-1, 0, 1):
            for ox in (-1, 0, 1):
                ok = ((hi + oy >= 0) & (hi + oy < H) &
                      (wi + ox >= 0) & (wi + ox < W))
                taps_meta.append(((-(oy * W + ox)) % nhw, ok))

        def bn(t, g_ref, b_ref):
            # Training-mode BN in a single data sweep: var = E[t^2] - mean^2 (biased), f32.
            inv_m = 1.0 / t.shape[1]
            s1 = jnp.sum(t, axis=1, keepdims=True)
            s2 = jnp.sum(t * t, axis=1, keepdims=True)
            mean = s1 * inv_m
            var = s2 * inv_m - mean * mean
            scale = g_ref[...] * lax.rsqrt(var + EPS)
            shift = b_ref[...] - mean * scale
            return t * scale + shift

        def conv3x3(t, w2d):
            # 3x3, stride 1, pad 1: one matmul over tap-folded channels (K = 9*Cin_pad).
            taps = []
            for shift, ok in taps_meta:
                s = t if shift == 0 else pltpu.roll(t, shift=shift, axis=1)
                taps.append(jnp.where(ok, s, 0.0))
            patches = jnp.concatenate(taps, axis=0)          # (9*Cin_pad, NHW)
            return jnp.dot(w2d, patches, preferred_element_type=jnp.float32)

        out = bn(x, g1_ref, b1_ref)                          # bn1
        out = conv3x3(out, w1_ref[...])                      # conv1 (stride 1)
        out = bn(out, g2_ref, b2_ref)                        # bn2
        out = jnp.where(out >= 0, out, al_ref[...] * out)    # PReLU (per-channel alpha)
        out = conv3x3(out, w2_ref[...])                      # conv2 (stride 1)
        out = bn(out, g3_ref, b3_ref)                        # bn3
        o_ref[...] = (out + x).astype(o_ref.dtype)           # += residual

    return kernel


def basic_block_v3(x, params):
    """x: (N, C, H, W) NCHW (PyTorch layout); params in PyTorch layouts (OIHW, (C,))."""
    g1, b1, w1, g2, b2, alpha, w2, g3, b3 = params
    N, C1, H, W = x.shape
    Cm = w1.shape[0]
    C2 = w2.shape[0]
    assert C2 == C1, "residual add requires out_c2 == in_c1 (downsample=None)"
    NHW = N * H * W

    Cmp = _round_up8(Cm)
    Cp = _round_up8(max(C1, C2))     # shared padded channel count for x / output

    def pad_rows(a, rows):
        return jnp.pad(a, ((0, rows - a.shape[0]),) + ((0, 0),) * (a.ndim - 1))

    def chan_vec(v, cp):
        return pad_rows(jnp.asarray(v, jnp.float32).reshape(-1, 1), cp)

    def conv_w2d(w, cinp, coutp):
        # OIHW (cout, cin, 3, 3) -> (cout_pad, 9*cin_pad), tap-major order (dy, dx, cin).
        w = jnp.asarray(w, jnp.float32)
        cout, cin = w.shape[0], w.shape[1]
        w4 = jnp.transpose(w, (0, 2, 3, 1))                       # (cout, 3, 3, cin)
        w4 = jnp.pad(w4, ((0, 0), (0, 0), (0, 0), (0, cinp - cin)))
        return pad_rows(w4.reshape(cout, 9 * cinp), coutp)

    # Lane-dense activation slab: (C_pad, N*H*W), channels on sublanes.
    xk = pad_rows(jnp.transpose(x, (1, 0, 2, 3)).reshape(C1, NHW).astype(jnp.float32), Cp)

    # Precomputed per-lane (h, w) coordinates (keeps integer div/mod out of the kernel).
    lane = jnp.arange(NHW, dtype=jnp.int32)
    hik = ((lane // W) % H).reshape(1, NHW)
    wik = (lane % W).reshape(1, NHW)

    ins = (
        xk, hik, wik,
        chan_vec(g1, Cp), chan_vec(b1, Cp),
        conv_w2d(w1, Cp, Cmp),
        chan_vec(g2, Cmp), chan_vec(b2, Cmp), chan_vec(alpha, Cmp),
        conv_w2d(w2, Cmp, Cp),
        chan_vec(g3, Cp), chan_vec(b3, Cp),
    )

    vmem = pl.BlockSpec(memory_space=pltpu.MemorySpace.VMEM)
    outk = pl.pallas_call(
        _make_kernel(H, W),
        out_shape=jax.ShapeDtypeStruct((Cp, NHW), jnp.float32),
        in_specs=[vmem] * len(ins),
        out_specs=vmem,
        compiler_params=pltpu.CompilerParams(vmem_limit_bytes=32 * 1024 * 1024),
    )(*ins)

    out = outk[:C2].reshape(C2, N, H, W)
    return jnp.transpose(out, (1, 0, 2, 3)).astype(x.dtype)


def ref_forward(x, params):
    """Pure-JAX reference mirroring the PyTorch forward (NCHW, training-mode BN)."""
    g1, b1, w1, g2, b2, alpha, w2, g3, b3 = params

    def bn(t, g, b):
        mean = t.mean(axis=(0, 2, 3), keepdims=True)
        var = ((t - mean) ** 2).mean(axis=(0, 2, 3), keepdims=True)
        return (t - mean) / jnp.sqrt(var + EPS) * g.reshape(1, -1, 1, 1) + b.reshape(1, -1, 1, 1)

    def conv(t, w):
        return lax.conv_general_dilated(
            t, w, window_strides=(1, 1), padding=((1, 1), (1, 1)),
            dimension_numbers=('NCHW', 'OIHW', 'NCHW'))

    out = bn(x, g1, b1)
    out = conv(out, w1)
    out = bn(out, g2, b2)
    out = jnp.where(out >= 0, out, alpha.reshape(1, -1, 1, 1) * out)
    out = conv(out, w2)
    out = bn(out, g3, b3)
    return out + x


if __name__ == "__main__":
    # BasicBlock_v3(c_in=(4, 8), c_out=(8, 4), stride=1, downsample=None), NCHW like PyTorch.
    N, H, W = 2, 16, 16
    in_c1, out_c1 = 4, 8       # bn1 / conv1
    in_c2, out_c2 = 8, 4       # conv2 (out_c2 must equal in_c1 for the residual add)

    key = jax.random.PRNGKey(0)
    ks = jax.random.split(key, 10)

    x = jax.random.normal(ks[0], (N, in_c1, H, W), jnp.float32)

    # PyTorch defaults would be gamma=1, beta=0, alpha=0.25; perturb so every term matters.
    g1 = 1.0 + 0.1 * jax.random.normal(ks[1], (in_c1,), jnp.float32)
    b1 = 0.1 * jax.random.normal(ks[2], (in_c1,), jnp.float32)
    w1 = 0.2 * jax.random.normal(ks[3], (out_c1, in_c1, 3, 3), jnp.float32)
    g2 = 1.0 + 0.1 * jax.random.normal(ks[4], (out_c1,), jnp.float32)
    b2 = 0.1 * jax.random.normal(ks[5], (out_c1,), jnp.float32)
    alpha = 0.25 + 0.05 * jax.random.normal(ks[6], (out_c1,), jnp.float32)
    w2 = 0.2 * jax.random.normal(ks[7], (out_c2, in_c2, 3, 3), jnp.float32)
    g3 = 1.0 + 0.1 * jax.random.normal(ks[8], (out_c2,), jnp.float32)
    b3 = 0.1 * jax.random.normal(ks[9], (out_c2,), jnp.float32)

    params = (g1, b1, w1, g2, b2, alpha, w2, g3, b3)

    out = jax.block_until_ready(basic_block_v3(x, params))
    ref = jax.block_until_ready(ref_forward(x, params))

    assert out.shape == (N, out_c2, H, W)
    max_err = jnp.max(jnp.abs(out - ref))
    assert jnp.allclose(out, ref, atol=2e-3, rtol=2e-3), f"max abs diff {max_err}"

    print("KERNEL_OK")
</pallas_src>

<mosaic_0001>
module attributes {stable_mosaic.version = 11 : i64} {
  func.func @kernel(%arg0: memref<8x512xf32, #tpu.memory_space<vmem>>, %arg1: memref<1x512xi32, #tpu.memory_space<vmem>>, %arg2: memref<1x512xi32, #tpu.memory_space<vmem>>, %arg3: memref<8x1xf32, #tpu.memory_space<vmem>>, %arg4: memref<8x1xf32, #tpu.memory_space<vmem>>, %arg5: memref<8x72xf32, #tpu.memory_space<vmem>>, %arg6: memref<8x1xf32, #tpu.memory_space<vmem>>, %arg7: memref<8x1xf32, #tpu.memory_space<vmem>>, %arg8: memref<8x1xf32, #tpu.memory_space<vmem>>, %arg9: memref<8x72xf32, #tpu.memory_space<vmem>>, %arg10: memref<8x1xf32, #tpu.memory_space<vmem>>, %arg11: memref<8x1xf32, #tpu.memory_space<vmem>>, %arg12: memref<8x512xf32, #tpu.memory_space<vmem>>) attributes {dimension_semantics = [], scalar_prefetch = 0 : i64, scratch_operands = 0 : i64, tpu.core_type = #tpu.core_type<tc>} {
    %c0 = arith.constant 0 : index
    %c0_0 = arith.constant 0 : index
    %0 = vector.load %arg0[%c0, %c0_0] : memref<8x512xf32, #tpu.memory_space<vmem>>, vector<8x512xf32>
    %c0_1 = arith.constant 0 : index
    %c0_2 = arith.constant 0 : index
    %1 = vector.load %arg1[%c0_1, %c0_2] : memref<1x512xi32, #tpu.memory_space<vmem>>, vector<1x512xi32>
    %c0_3 = arith.constant 0 : index
    %c0_4 = arith.constant 0 : index
    %2 = vector.load %arg2[%c0_3, %c0_4] : memref<1x512xi32, #tpu.memory_space<vmem>>, vector<1x512xi32>
    %c-1_i32 = arith.constant -1 : i32
    %3 = vector.broadcast %c-1_i32 : i32 to vector<1x512xi32>
    %4 = arith.addi %1, %3 : vector<1x512xi32>
    %c0_i32 = arith.constant 0 : i32
    %5 = vector.broadcast %c0_i32 : i32 to vector<1x512xi32>
    %6 = arith.cmpi sge, %4, %5 : vector<1x512xi32>
    %c-1_i32_5 = arith.constant -1 : i32
    %7 = vector.broadcast %c-1_i32_5 : i32 to vector<1x512xi32>
    %8 = arith.addi %1, %7 : vector<1x512xi32>
    %c16_i32 = arith.constant 16 : i32
    %9 = vector.broadcast %c16_i32 : i32 to vector<1x512xi32>
    %10 = arith.cmpi slt, %8, %9 : vector<1x512xi32>
    %11 = arith.andi %6, %10 : vector<1x512xi1>
    %c-1_i32_6 = arith.constant -1 : i32
    %12 = vector.broadcast %c-1_i32_6 : i32 to vector<1x512xi32>
    %13 = arith.addi %2, %12 : vector<1x512xi32>
    %c0_i32_7 = arith.constant 0 : i32
    %14 = vector.broadcast %c0_i32_7 : i32 to vector<1x512xi32>
    %15 = arith.cmpi sge, %13, %14 : vector<1x512xi32>
    %16 = arith.andi %11, %15 : vector<1x512xi1>
    %c-1_i32_8 = arith.constant -1 : i32
    %17 = vector.broadcast %c-1_i32_8 : i32 to vector<1x512xi32>
    %18 = arith.addi %2, %17 : vector<1x512xi32>
    %c16_i32_9 = arith.constant 16 : i32
    %19 = vector.broadcast %c16_i32_9 : i32 to vector<1x512xi32>
    %20 = arith.cmpi slt, %18, %19 : vector<1x512xi32>
    %21 = arith.andi %16, %20 : vector<1x512xi1>
    %c-1_i32_10 = arith.constant -1 : i32
    %22 = vector.broadcast %c-1_i32_10 : i32 to vector<1x512xi32>
    %23 = arith.addi %1, %22 : vector<1x512xi32>
    %c0_i32_11 = arith.constant 0 : i32
    %24 = vector.broadcast %c0_i32_11 : i32 to vector<1x512xi32>
    %25 = arith.cmpi sge, %23, %24 : vector<1x512xi32>
    %c-1_i32_12 = arith.constant -1 : i32
    %26 = vector.broadcast %c-1_i32_12 : i32 to vector<1x512xi32>
    %27 = arith.addi %1, %26 : vector<1x512xi32>
    %c16_i32_13 = arith.constant 16 : i32
    %28 = vector.broadcast %c16_i32_13 : i32 to vector<1x512xi32>
    %29 = arith.cmpi slt, %27, %28 : vector<1x512xi32>
    %30 = arith.andi %25, %29 : vector<1x512xi1>
    %c0_i32_14 = arith.constant 0 : i32
    %31 = vector.broadcast %c0_i32_14 : i32 to vector<1x512xi32>
    %32 = arith.addi %2, %31 : vector<1x512xi32>
    %c0_i32_15 = arith.constant 0 : i32
    %33 = vector.broadcast %c0_i32_15 : i32 to vector<1x512xi32>
    %34 = arith.cmpi sge, %32, %33 : vector<1x512xi32>
    %35 = arith.andi %30, %34 : vector<1x512xi1>
    %c0_i32_16 = arith.constant 0 : i32
    %36 = vector.broadcast %c0_i32_16 : i32 to vector<1x512xi32>
    %37 = arith.addi %2, %36 : vector<1x512xi32>
    %c16_i32_17 = arith.constant 16 : i32
    %38 = vector.broadcast %c16_i32_17 : i32 to vector<1x512xi32>
    %39 = arith.cmpi slt, %37, %38 : vector<1x512xi32>
    %40 = arith.andi %35, %39 : vector<1x512xi1>
    %c-1_i32_18 = arith.constant -1 : i32
    %41 = vector.broadcast %c-1_i32_18 : i32 to vector<1x512xi32>
    %42 = arith.addi %1, %41 : vector<1x512xi32>
    %c0_i32_19 = arith.constant 0 : i32
    %43 = vector.broadcast %c0_i32_19 : i32 to vector<1x512xi32>
    %44 = arith.cmpi sge, %42, %43 : vector<1x512xi32>
    %c-1_i32_20 = arith.constant -1 : i32
    %45 = vector.broadcast %c-1_i32_20 : i32 to vector<1x512xi32>
    %46 = arith.addi %1, %45 : vector<1x512xi32>
    %c16_i32_21 = arith.constant 16 : i32
    %47 = vector.broadcast %c16_i32_21 : i32 to vector<1x512xi32>
    %48 = arith.cmpi slt, %46, %47 : vector<1x512xi32>
    %49 = arith.andi %44, %48 : vector<1x512xi1>
    %c1_i32 = arith.constant 1 : i32
    %50 = vector.broadcast %c1_i32 : i32 to vector<1x512xi32>
    %51 = arith.addi %2, %50 : vector<1x512xi32>
    %c0_i32_22 = arith.constant 0 : i32
    %52 = vector.broadcast %c0_i32_22 : i32 to vector<1x512xi32>
    %53 = arith.cmpi sge, %51, %52 : vector<1x512xi32>
    %54 = arith.andi %49, %53 : vector<1x512xi1>
    %c1_i32_23 = arith.constant 1 : i32
    %55 = vector.broadcast %c1_i32_23 : i32 to vector<1x512xi32>
    %56 = arith.addi %2, %55 : vector<1x512xi32>
    %c16_i32_24 = arith.constant 16 : i32
    %57 = vector.broadcast %c16_i32_24 : i32 to vector<1x512xi32>
    %58 = arith.cmpi slt, %56, %57 : vector<1x512xi32>
    %59 = arith.andi %54, %58 : vector<1x512xi1>
    %c0_i32_25 = arith.constant 0 : i32
    %60 = vector.broadcast %c0_i32_25 : i32 to vector<1x512xi32>
    %61 = arith.addi %1, %60 : vector<1x512xi32>
    %c0_i32_26 = arith.constant 0 : i32
    %62 = vector.broadcast %c0_i32_26 : i32 to vector<1x512xi32>
    %63 = arith.cmpi sge, %61, %62 : vector<1x512xi32>
    %c0_i32_27 = arith.constant 0 : i32
    %64 = vector.broadcast %c0_i32_27 : i32 to vector<1x512xi32>
    %65 = arith.addi %1, %64 : vector<1x512xi32>
    %c16_i32_28 = arith.constant 16 : i32
    %66 = vector.broadcast %c16_i32_28 : i32 to vector<1x512xi32>
    %67 = arith.cmpi slt, %65, %66 : vector<1x512xi32>
    %68 = arith.andi %63, %67 : vector<1x512xi1>
    %c-1_i32_29 = arith.constant -1 : i32
    %69 = vector.broadcast %c-1_i32_29 : i32 to vector<1x512xi32>
    %70 = arith.addi %2, %69 : vector<1x512xi32>
    %c0_i32_30 = arith.constant 0 : i32
    %71 = vector.broadcast %c0_i32_30 : i32 to vector<1x512xi32>
    %72 = arith.cmpi sge, %70, %71 : vector<1x512xi32>
    %73 = arith.andi %68, %72 : vector<1x512xi1>
    %c-1_i32_31 = arith.constant -1 : i32
    %74 = vector.broadcast %c-1_i32_31 : i32 to vector<1x512xi32>
    %75 = arith.addi %2, %74 : vector<1x512xi32>
    %c16_i32_32 = arith.constant 16 : i32
    %76 = vector.broadcast %c16_i32_32 : i32 to vector<1x512xi32>
    %77 = arith.cmpi slt, %75, %76 : vector<1x512xi32>
    %78 = arith.andi %73, %77 : vector<1x512xi1>
    %c0_i32_33 = arith.constant 0 : i32
    %79 = vector.broadcast %c0_i32_33 : i32 to vector<1x512xi32>
    %80 = arith.addi %1, %79 : vector<1x512xi32>
    %c0_i32_34 = arith.constant 0 : i32
    %81 = vector.broadcast %c0_i32_34 : i32 to vector<1x512xi32>
    %82 = arith.cmpi sge, %80, %81 : vector<1x512xi32>
    %c0_i32_35 = arith.constant 0 : i32
    %83 = vector.broadcast %c0_i32_35 : i32 to vector<1x512xi32>
    %84 = arith.addi %1, %83 : vector<1x512xi32>
    %c16_i32_36 = arith.constant 16 : i32
    %85 = vector.broadcast %c16_i32_36 : i32 to vector<1x512xi32>
    %86 = arith.cmpi slt, %84, %85 : vector<1x512xi32>
    %87 = arith.andi %82, %86 : vector<1x512xi1>
    %c0_i32_37 = arith.constant 0 : i32
    %88 = vector.broadcast %c0_i32_37 : i32 to vector<1x512xi32>
    %89 = arith.addi %2, %88 : vector<1x512xi32>
    %c0_i32_38 = arith.constant 0 : i32
    %90 = vector.broadcast %c0_i32_38 : i32 to vector<1x512xi32>
    %91 = arith.cmpi sge, %89, %90 : vector<1x512xi32>
    %92 = arith.andi %87, %91 : vector<1x512xi1>
    %c0_i32_39 = arith.constant 0 : i32
    %93 = vector.broadcast %c0_i32_39 : i32 to vector<1x512xi32>
    %94 = arith.addi %2, %93 : vector<1x512xi32>
    %c16_i32_40 = arith.constant 16 : i32
    %95 = vector.broadcast %c16_i32_40 : i32 to vector<1x512xi32>
    %96 = arith.cmpi slt, %94, %95 : vector<1x512xi32>
    %97 = arith.andi %92, %96 : vector<1x512xi1>
    %c0_i32_41 = arith.constant 0 : i32
    %98 = vector.broadcast %c0_i32_41 : i32 to vector<1x512xi32>
    %99 = arith.addi %1, %98 : vector<1x512xi32>
    %c0_i32_42 = arith.constant 0 : i32
    %100 = vector.broadcast %c0_i32_42 : i32 to vector<1x512xi32>
    %101 = arith.cmpi sge, %99, %100 : vector<1x512xi32>
    %c0_i32_43 = arith.constant 0 : i32
    %102 = vector.broadcast %c0_i32_43 : i32 to vector<1x512xi32>
    %103 = arith.addi %1, %102 : vector<1x512xi32>
    %c16_i32_44 = arith.constant 16 : i32
    %104 = vector.broadcast %c16_i32_44 : i32 to vector<1x512xi32>
    %105 = arith.cmpi slt, %103, %104 : vector<1x512xi32>
    %106 = arith.andi %101, %105 : vector<1x512xi1>
    %c1_i32_45 = arith.constant 1 : i32
    %107 = vector.broadcast %c1_i32_45 : i32 to vector<1x512xi32>
    %108 = arith.addi %2, %107 : vector<1x512xi32>
    %c0_i32_46 = arith.constant 0 : i32
    %109 = vector.broadcast %c0_i32_46 : i32 to vector<1x512xi32>
    %110 = arith.cmpi sge, %108, %109 : vector<1x512xi32>
    %111 = arith.andi %106, %110 : vector<1x512xi1>
    %c1_i32_47 = arith.constant 1 : i32
    %112 = vector.broadcast %c1_i32_47 : i32 to vector<1x512xi32>
    %113 = arith.addi %2, %112 : vector<1x512xi32>
    %c16_i32_48 = arith.constant 16 : i32
    %114 = vector.broadcast %c16_i32_48 : i32 to vector<1x512xi32>
    %115 = arith.cmpi slt, %113, %114 : vector<1x512xi32>
    %116 = arith.andi %111, %115 : vector<1x512xi1>
    %c1_i32_49 = arith.constant 1 : i32
    %117 = vector.broadcast %c1_i32_49 : i32 to vector<1x512xi32>
    %118 = arith.addi %1, %117 : vector<1x512xi32>
    %c0_i32_50 = arith.constant 0 : i32
    %119 = vector.broadcast %c0_i32_50 : i32 to vector<1x512xi32>
    %120 = arith.cmpi sge, %118, %119 : vector<1x512xi32>
    %c1_i32_51 = arith.constant 1 : i32
    %121 = vector.broadcast %c1_i32_51 : i32 to vector<1x512xi32>
    %122 = arith.addi %1, %121 : vector<1x512xi32>
    %c16_i32_52 = arith.constant 16 : i32
    %123 = vector.broadcast %c16_i32_52 : i32 to vector<1x512xi32>
    %124 = arith.cmpi slt, %122, %123 : vector<1x512xi32>
    %125 = arith.andi %120, %124 : vector<1x512xi1>
    %c-1_i32_53 = arith.constant -1 : i32
    %126 = vector.broadcast %c-1_i32_53 : i32 to vector<1x512xi32>
    %127 = arith.addi %2, %126 : vector<1x512xi32>
    %c0_i32_54 = arith.constant 0 : i32
    %128 = vector.broadcast %c0_i32_54 : i32 to vector<1x512xi32>
    %129 = arith.cmpi sge, %127, %128 : vector<1x512xi32>
    %130 = arith.andi %125, %129 : vector<1x512xi1>
    %c-1_i32_55 = arith.constant -1 : i32
    %131 = vector.broadcast %c-1_i32_55 : i32 to vector<1x512xi32>
    %132 = arith.addi %2, %131 : vector<1x512xi32>
    %c16_i32_56 = arith.constant 16 : i32
    %133 = vector.broadcast %c16_i32_56 : i32 to vector<1x512xi32>
    %134 = arith.cmpi slt, %132, %133 : vector<1x512xi32>
    %135 = arith.andi %130, %134 : vector<1x512xi1>
    %c1_i32_57 = arith.constant 1 : i32
    %136 = vector.broadcast %c1_i32_57 : i32 to vector<1x512xi32>
    %137 = arith.addi %1, %136 : vector<1x512xi32>
    %c0_i32_58 = arith.constant 0 : i32
    %138 = vector.broadcast %c0_i32_58 : i32 to vector<1x512xi32>
    %139 = arith.cmpi sge, %137, %138 : vector<1x512xi32>
    %c1_i32_59 = arith.constant 1 : i32
    %140 = vector.broadcast %c1_i32_59 : i32 to vector<1x512xi32>
    %141 = arith.addi %1, %140 : vector<1x512xi32>
    %c16_i32_60 = arith.constant 16 : i32
    %142 = vector.broadcast %c16_i32_60 : i32 to vector<1x512xi32>
    %143 = arith.cmpi slt, %141, %142 : vector<1x512xi32>
    %144 = arith.andi %139, %143 : vector<1x512xi1>
    %c0_i32_61 = arith.constant 0 : i32
    %145 = vector.broadcast %c0_i32_61 : i32 to vector<1x512xi32>
    %146 = arith.addi %2, %145 : vector<1x512xi32>
    %c0_i32_62 = arith.constant 0 : i32
    %147 = vector.broadcast %c0_i32_62 : i32 to vector<1x512xi32>
    %148 = arith.cmpi sge, %146, %147 : vector<1x512xi32>
    %149 = arith.andi %144, %148 : vector<1x512xi1>
    %c0_i32_63 = arith.constant 0 : i32
    %150 = vector.broadcast %c0_i32_63 : i32 to vector<1x512xi32>
    %151 = arith.addi %2, %150 : vector<1x512xi32>
    %c16_i32_64 = arith.constant 16 : i32
    %152 = vector.broadcast %c16_i32_64 : i32 to vector<1x512xi32>
    %153 = arith.cmpi slt, %151, %152 : vector<1x512xi32>
    %154 = arith.andi %149, %153 : vector<1x512xi1>
    %c1_i32_65 = arith.constant 1 : i32
    %155 = vector.broadcast %c1_i32_65 : i32 to vector<1x512xi32>
    %156 = arith.addi %1, %155 : vector<1x512xi32>
    %c0_i32_66 = arith.constant 0 : i32
    %157 = vector.broadcast %c0_i32_66 : i32 to vector<1x512xi32>
    %158 = arith.cmpi sge, %156, %157 : vector<1x512xi32>
    %c1_i32_67 = arith.constant 1 : i32
    %159 = vector.broadcast %c1_i32_67 : i32 to vector<1x512xi32>
    %160 = arith.addi %1, %159 : vector<1x512xi32>
    %c16_i32_68 = arith.constant 16 : i32
    %161 = vector.broadcast %c16_i32_68 : i32 to vector<1x512xi32>
    %162 = arith.cmpi slt, %160, %161 : vector<1x512xi32>
    %163 = arith.andi %158, %162 : vector<1x512xi1>
    %c1_i32_69 = arith.constant 1 : i32
    %164 = vector.broadcast %c1_i32_69 : i32 to vector<1x512xi32>
    %165 = arith.addi %2, %164 : vector<1x512xi32>
    %c0_i32_70 = arith.constant 0 : i32
    %166 = vector.broadcast %c0_i32_70 : i32 to vector<1x512xi32>
    %167 = arith.cmpi sge, %165, %166 : vector<1x512xi32>
    %168 = arith.andi %163, %167 : vector<1x512xi1>
    %c1_i32_71 = arith.constant 1 : i32
    %169 = vector.broadcast %c1_i32_71 : i32 to vector<1x512xi32>
    %170 = arith.addi %2, %169 : vector<1x512xi32>
    %c16_i32_72 = arith.constant 16 : i32
    %171 = vector.broadcast %c16_i32_72 : i32 to vector<1x512xi32>
    %172 = arith.cmpi slt, %170, %171 : vector<1x512xi32>
    %173 = arith.andi %168, %172 : vector<1x512xi1>
    %cst = arith.constant dense<0.000000e+00> : vector<8xf32>
    %174 = vector.multi_reduction <add>, %0, %cst [1] : vector<8x512xf32> to vector<8xf32>
    %175 = vector.shape_cast %174 : vector<8xf32> to vector<8x1xf32>
    %176 = arith.mulf %0, %0 : vector<8x512xf32>
    %cst_73 = arith.constant dense<0.000000e+00> : vector<8xf32>
    %177 = vector.multi_reduction <add>, %176, %cst_73 [1] : vector<8x512xf32> to vector<8xf32>
    %178 = vector.shape_cast %177 : vector<8xf32> to vector<8x1xf32>
    %cst_74 = arith.constant 0.001953125 : f32
    %179 = vector.broadcast %cst_74 : f32 to vector<8x1xf32>
    %180 = arith.mulf %175, %179 : vector<8x1xf32>
    %cst_75 = arith.constant 0.001953125 : f32
    %181 = vector.broadcast %cst_75 : f32 to vector<8x1xf32>
    %182 = arith.mulf %178, %181 : vector<8x1xf32>
    %183 = arith.mulf %180, %180 : vector<8x1xf32>
    %184 = arith.subf %182, %183 : vector<8x1xf32>
    %c0_76 = arith.constant 0 : index
    %c0_77 = arith.constant 0 : index
    %185 = vector.load %arg3[%c0_76, %c0_77] : memref<8x1xf32, #tpu.memory_space<vmem>>, vector<8x1xf32>
    %cst_78 = arith.constant 2.000000e-05 : f32
    %186 = vector.broadcast %cst_78 : f32 to vector<8x1xf32>
    %187 = arith.addf %184, %186 : vector<8x1xf32>
    %188 = math.rsqrt %187 : vector<8x1xf32>
    %189 = arith.mulf %185, %188 : vector<8x1xf32>
    %c0_79 = arith.constant 0 : index
    %c0_80 = arith.constant 0 : index
    %190 = vector.load %arg4[%c0_79, %c0_80] : memref<8x1xf32, #tpu.memory_space<vmem>>, vector<8x1xf32>
    %191 = arith.mulf %180, %189 : vector<8x1xf32>
    %192 = arith.subf %190, %191 : vector<8x1xf32>
    %193 = vector.broadcast %189 : vector<8x1xf32> to vector<8x512xf32>
    %194 = arith.mulf %0, %193 : vector<8x512xf32>
    %195 = vector.broadcast %192 : vector<8x1xf32> to vector<8x512xf32>
    %196 = arith.addf %194, %195 : vector<8x512xf32>
    %c0_81 = arith.constant 0 : index
    %c0_82 = arith.constant 0 : index
    %197 = vector.load %arg5[%c0_81, %c0_82] : memref<8x72xf32, #tpu.memory_space<vmem>>, vector<8x72xf32>
    %c17_i32 = arith.constant 17 : i32
    %198 = tpu.dynamic_rotate %196 by %c17_i32 dim 1 : vector<8x512xf32>, i32 -> vector<8x512xf32>
    %cst_83 = arith.constant 0.000000e+00 : f32
    %199 = vector.shape_cast %21 : vector<1x512xi1> to vector<1x512xi1>
    %200 = vector.broadcast %199 : vector<1x512xi1> to vector<8x512xi1>
    %201 = vector.broadcast %cst_83 : f32 to vector<8x512xf32>
    %202 = arith.select %200, %198, %201 : vector<8x512xi1>, vector<8x512xf32>
    %c16_i32_84 = arith.constant 16 : i32
    %203 = tpu.dynamic_rotate %196 by %c16_i32_84 dim 1 : vector<8x512xf32>, i32 -> vector<8x512xf32>
    %cst_85 = arith.constant 0.000000e+00 : f32
    %204 = vector.shape_cast %40 : vector<1x512xi1> to vector<1x512xi1>
    %205 = vector.broadcast %204 : vector<1x512xi1> to vector<8x512xi1>
    %206 = vector.broadcast %cst_85 : f32 to vector<8x512xf32>
    %207 = arith.select %205, %203, %206 : vector<8x512xi1>, vector<8x512xf32>
    %c15_i32 = arith.constant 15 : i32
    %208 = tpu.dynamic_rotate %196 by %c15_i32 dim 1 : vector<8x512xf32>, i32 -> vector<8x512xf32>
    %cst_86 = arith.constant 0.000000e+00 : f32
    %209 = vector.shape_cast %59 : vector<1x512xi1> to vector<1x512xi1>
    %210 = vector.broadcast %209 : vector<1x512xi1> to vector<8x512xi1>
    %211 = vector.broadcast %cst_86 : f32 to vector<8x512xf32>
    %212 = arith.select %210, %208, %211 : vector<8x512xi1>, vector<8x512xf32>
    %c1_i32_87 = arith.constant 1 : i32
    %213 = tpu.dynamic_rotate %196 by %c1_i32_87 dim 1 : vector<8x512xf32>, i32 -> vector<8x512xf32>
    %cst_88 = arith.constant 0.000000e+00 : f32
    %214 = vector.shape_cast %78 : vector<1x512xi1> to vector<1x512xi1>
    %215 = vector.broadcast %214 : vector<1x512xi1> to vector<8x512xi1>
    %216 = vector.broadcast %cst_88 : f32 to vector<8x512xf32>
    %217 = arith.select %215, %213, %216 : vector<8x512xi1>, vector<8x512xf32>
    %cst_89 = arith.constant 0.000000e+00 : f32
    %218 = vector.shape_cast %97 : vector<1x512xi1> to vector<1x512xi1>
    %219 = vector.broadcast %218 : vector<1x512xi1> to vector<8x512xi1>
    %220 = vector.broadcast %cst_89 : f32 to vector<8x512xf32>
    %221 = arith.select %219, %196, %220 : vector<8x512xi1>, vector<8x512xf32>
    %c511_i32 = arith.constant 511 : i32
    %222 = tpu.dynamic_rotate %196 by %c511_i32 dim 1 : vector<8x512xf32>, i32 -> vector<8x512xf32>
    %cst_90 = arith.constant 0.000000e+00 : f32
    %223 = vector.shape_cast %116 : vector<1x512xi1> to vector<1x512xi1>
    %224 = vector.broadcast %223 : vector<1x512xi1> to vector<8x512xi1>
    %225 = vector.broadcast %cst_90 : f32 to vector<8x512xf32>
    %226 = arith.select %224, %222, %225 : vector<8x512xi1>, vector<8x512xf32>
    %c497_i32 = arith.constant 497 : i32
    %227 = tpu.dynamic_rotate %196 by %c497_i32 dim 1 : vector<8x512xf32>, i32 -> vector<8x512xf32>
    %cst_91 = arith.constant 0.000000e+00 : f32
    %228 = vector.shape_cast %135 : vector<1x512xi1> to vector<1x512xi1>
    %229 = vector.broadcast %228 : vector<1x512xi1> to vector<8x512xi1>
    %230 = vector.broadcast %cst_91 : f32 to vector<8x512xf32>
    %231 = arith.select %229, %227, %230 : vector<8x512xi1>, vector<8x512xf32>
    %c496_i32 = arith.constant 496 : i32
    %232 = tpu.dynamic_rotate %196 by %c496_i32 dim 1 : vector<8x512xf32>, i32 -> vector<8x512xf32>
    %cst_92 = arith.constant 0.000000e+00 : f32
    %233 = vector.shape_cast %154 : vector<1x512xi1> to vector<1x512xi1>
    %234 = vector.broadcast %233 : vector<1x512xi1> to vector<8x512xi1>
    %235 = vector.broadcast %cst_92 : f32 to vector<8x512xf32>
    %236 = arith.select %234, %232, %235 : vector<8x512xi1>, vector<8x512xf32>
    %c495_i32 = arith.constant 495 : i32
    %237 = tpu.dynamic_rotate %196 by %c495_i32 dim 1 : vector<8x512xf32>, i32 -> vector<8x512xf32>
    %cst_93 = arith.constant 0.000000e+00 : f32
    %238 = vector.shape_cast %173 : vector<1x512xi1> to vector<1x512xi1>
    %239 = vector.broadcast %238 : vector<1x512xi1> to vector<8x512xi1>
    %240 = vector.broadcast %cst_93 : f32 to vector<8x512xf32>
    %241 = arith.select %239, %237, %240 : vector<8x512xi1>, vector<8x512xf32>
    %242 = tpu.concatenate %202, %207, %212, %217, %221, %226, %231, %236, %241 in 0 : vector<8x512xf32>, vector<8x512xf32>, vector<8x512xf32>, vector<8x512xf32>, vector<8x512xf32>, vector<8x512xf32>, vector<8x512xf32>, vector<8x512xf32>, vector<8x512xf32> -> vector<72x512xf32>
    %cst_94 = arith.constant dense<0.000000e+00> : vector<8x512xf32>
    %243 = tpu.matmul %197, %242, %cst_94 {dimension_numbers = #tpu.dot_dimension_numbers<[1], [0], [0], [1], [0, 0, 1, 1], [], []>} : vector<8x72xf32>, vector<72x512xf32>, vector<8x512xf32> -> vector<8x512xf32>
    %cst_95 = arith.constant dense<0.000000e+00> : vector<8xf32>
    %244 = vector.multi_reduction <add>, %243, %cst_95 [1] : vector<8x512xf32> to vector<8xf32>
    %245 = vector.shape_cast %244 : vector<8xf32> to vector<8x1xf32>
    %246 = arith.mulf %243, %243 : vector<8x512xf32>
    %cst_96 = arith.constant dense<0.000000e+00> : vector<8xf32>
    %247 = vector.multi_reduction <add>, %246, %cst_96 [1] : vector<8x512xf32> to vector<8xf32>
    %248 = vector.shape_cast %247 : vector<8xf32> to vector<8x1xf32>
    %cst_97 = arith.constant 0.001953125 : f32
    %249 = vector.broadcast %cst_97 : f32 to vector<8x1xf32>
    %250 = arith.mulf %245, %249 : vector<8x1xf32>
    %cst_98 = arith.constant 0.001953125 : f32
    %251 = vector.broadcast %cst_98 : f32 to vector<8x1xf32>
    %252 = arith.mulf %248, %251 : vector<8x1xf32>
    %253 = arith.mulf %250, %250 : vector<8x1xf32>
    %254 = arith.subf %252, %253 : vector<8x1xf32>
    %c0_99 = arith.constant 0 : index
    %c0_100 = arith.constant 0 : index
    %255 = vector.load %arg6[%c0_99, %c0_100] : memref<8x1xf32, #tpu.memory_space<vmem>>, vector<8x1xf32>
    %cst_101 = arith.constant 2.000000e-05 : f32
    %256 = vector.broadcast %cst_101 : f32 to vector<8x1xf32>
    %257 = arith.addf %254, %256 : vector<8x1xf32>
    %258 = math.rsqrt %257 : vector<8x1xf32>
    %259 = arith.mulf %255, %258 : vector<8x1xf32>
    %c0_102 = arith.constant 0 : index
    %c0_103 = arith.constant 0 : index
    %260 = vector.load %arg7[%c0_102, %c0_103] : memref<8x1xf32, #tpu.memory_space<vmem>>, vector<8x1xf32>
    %261 = arith.mulf %250, %259 : vector<8x1xf32>
    %262 = arith.subf %260, %261 : vector<8x1xf32>
    %263 = vector.broadcast %259 : vector<8x1xf32> to vector<8x512xf32>
    %264 = arith.mulf %243, %263 : vector<8x512xf32>
    %265 = vector.broadcast %262 : vector<8x1xf32> to vector<8x512xf32>
    %266 = arith.addf %264, %265 : vector<8x512xf32>
    %cst_104 = arith.constant 0.000000e+00 : f32
    %267 = vector.broadcast %cst_104 : f32 to vector<8x512xf32>
    %268 = arith.cmpf oge, %266, %267 : vector<8x512xf32>
    %c0_105 = arith.constant 0 : index
    %c0_106 = arith.constant 0 : index
    %269 = vector.load %arg8[%c0_105, %c0_106] : memref<8x1xf32, #tpu.memory_space<vmem>>, vector<8x1xf32>
    %270 = vector.broadcast %269 : vector<8x1xf32> to vector<8x512xf32>
    %271 = arith.mulf %270, %266 : vector<8x512xf32>
    %272 = arith.select %268, %266, %271 : vector<8x512xi1>, vector<8x512xf32>
    %c0_107 = arith.constant 0 : index
    %c0_108 = arith.constant 0 : index
    %273 = vector.load %arg9[%c0_107, %c0_108] : memref<8x72xf32, #tpu.memory_space<vmem>>, vector<8x72xf32>
    %c17_i32_109 = arith.constant 17 : i32
    %274 = tpu.dynamic_rotate %272 by %c17_i32_109 dim 1 : vector<8x512xf32>, i32 -> vector<8x512xf32>
    %cst_110 = arith.constant 0.000000e+00 : f32
    %275 = vector.shape_cast %21 : vector<1x512xi1> to vector<1x512xi1>
    %276 = vector.broadcast %275 : vector<1x512xi1> to vector<8x512xi1>
    %277 = vector.broadcast %cst_110 : f32 to vector<8x512xf32>
    %278 = arith.select %276, %274, %277 : vector<8x512xi1>, vector<8x512xf32>
    %c16_i32_111 = arith.constant 16 : i32
    %279 = tpu.dynamic_rotate %272 by %c16_i32_111 dim 1 : vector<8x512xf32>, i32 -> vector<8x512xf32>
    %cst_112 = arith.constant 0.000000e+00 : f32
    %280 = vector.shape_cast %40 : vector<1x512xi1> to vector<1x512xi1>
    %281 = vector.broadcast %280 : vector<1x512xi1> to vector<8x512xi1>
    %282 = vector.broadcast %cst_112 : f32 to vector<8x512xf32>
    %283 = arith.select %281, %279, %282 : vector<8x512xi1>, vector<8x512xf32>
    %c15_i32_113 = arith.constant 15 : i32
    %284 = tpu.dynamic_rotate %272 by %c15_i32_113 dim 1 : vector<8x512xf32>, i32 -> vector<8x512xf32>
    %cst_114 = arith.constant 0.000000e+00 : f32
    %285 = vector.shape_cast %59 : vector<1x512xi1> to vector<1x512xi1>
    %286 = vector.broadcast %285 : vector<1x512xi1> to vector<8x512xi1>
    %287 = vector.broadcast %cst_114 : f32 to vector<8x512xf32>
    %288 = arith.select %286, %284, %287 : vector<8x512xi1>, vector<8x512xf32>
    %c1_i32_115 = arith.constant 1 : i32
    %289 = tpu.dynamic_rotate %272 by %c1_i32_115 dim 1 : vector<8x512xf32>, i32 -> vector<8x512xf32>
    %cst_116 = arith.constant 0.000000e+00 : f32
    %290 = vector.shape_cast %78 : vector<1x512xi1> to vector<1x512xi1>
    %291 = vector.broadcast %290 : vector<1x512xi1> to vector<8x512xi1>
    %292 = vector.broadcast %cst_116 : f32 to vector<8x512xf32>
    %293 = arith.select %291, %289, %292 : vector<8x512xi1>, vector<8x512xf32>
    %cst_117 = arith.constant 0.000000e+00 : f32
    %294 = vector.shape_cast %97 : vector<1x512xi1> to vector<1x512xi1>
    %295 = vector.broadcast %294 : vector<1x512xi1> to vector<8x512xi1>
    %296 = vector.broadcast %cst_117 : f32 to vector<8x512xf32>
    %297 = arith.select %295, %272, %296 : vector<8x512xi1>, vector<8x512xf32>
    %c511_i32_118 = arith.constant 511 : i32
    %298 = tpu.dynamic_rotate %272 by %c511_i32_118 dim 1 : vector<8x512xf32>, i32 -> vector<8x512xf32>
    %cst_119 = arith.constant 0.000000e+00 : f32
    %299 = vector.shape_cast %116 : vector<1x512xi1> to vector<1x512xi1>
    %300 = vector.broadcast %299 : vector<1x512xi1> to vector<8x512xi1>
    %301 = vector.broadcast %cst_119 : f32 to vector<8x512xf32>
    %302 = arith.select %300, %298, %301 : vector<8x512xi1>, vector<8x512xf32>
    %c497_i32_120 = arith.constant 497 : i32
    %303 = tpu.dynamic_rotate %272 by %c497_i32_120 dim 1 : vector<8x512xf32>, i32 -> vector<8x512xf32>
    %cst_121 = arith.constant 0.000000e+00 : f32
    %304 = vector.shape_cast %135 : vector<1x512xi1> to vector<1x512xi1>
    %305 = vector.broadcast %304 : vector<1x512xi1> to vector<8x512xi1>
    %306 = vector.broadcast %cst_121 : f32 to vector<8x512xf32>
    %307 = arith.select %305, %303, %306 : vector<8x512xi1>, vector<8x512xf32>
    %c496_i32_122 = arith.constant 496 : i32
    %308 = tpu.dynamic_rotate %272 by %c496_i32_122 dim 1 : vector<8x512xf32>, i32 -> vector<8x512xf32>
    %cst_123 = arith.constant 0.000000e+00 : f32
    %309 = vector.shape_cast %154 : vector<1x512xi1> to vector<1x512xi1>
    %310 = vector.broadcast %309 : vector<1x512xi1> to vector<8x512xi1>
    %311 = vector.broadcast %cst_123 : f32 to vector<8x512xf32>
    %312 = arith.select %310, %308, %311 : vector<8x512xi1>, vector<8x512xf32>
    %c495_i32_124 = arith.constant 495 : i32
    %313 = tpu.dynamic_rotate %272 by %c495_i32_124 dim 1 : vector<8x512xf32>, i32 -> vector<8x512xf32>
    %cst_125 = arith.constant 0.000000e+00 : f32
    %314 = vector.shape_cast %173 : vector<1x512xi1> to vector<1x512xi1>
    %315 = vector.broadcast %314 : vector<1x512xi1> to vector<8x512xi1>
    %316 = vector.broadcast %cst_125 : f32 to vector<8x512xf32>
    %317 = arith.select %315, %313, %316 : vector<8x512xi1>, vector<8x512xf32>
    %318 = tpu.concatenate %278, %283, %288, %293, %297, %302, %307, %312, %317 in 0 : vector<8x512xf32>, vector<8x512xf32>, vector<8x512xf32>, vector<8x512xf32>, vector<8x512xf32>, vector<8x512xf32>, vector<8x512xf32>, vector<8x512xf32>, vector<8x512xf32> -> vector<72x512xf32>
    %cst_126 = arith.constant dense<0.000000e+00> : vector<8x512xf32>
    %319 = tpu.matmul %273, %318, %cst_126 {dimension_numbers = #tpu.dot_dimension_numbers<[1], [0], [0], [1], [0, 0, 1, 1], [], []>} : vector<8x72xf32>, vector<72x512xf32>, vector<8x512xf32> -> vector<8x512xf32>
    %cst_127 = arith.constant dense<0.000000e+00> : vector<8xf32>
    %320 = vector.multi_reduction <add>, %319, %cst_127 [1] : vector<8x512xf32> to vector<8xf32>
    %321 = vector.shape_cast %320 : vector<8xf32> to vector<8x1xf32>
    %322 = arith.mulf %319, %319 : vector<8x512xf32>
    %cst_128 = arith.constant dense<0.000000e+00> : vector<8xf32>
    %323 = vector.multi_reduction <add>, %322, %cst_128 [1] : vector<8x512xf32> to vector<8xf32>
    %324 = vector.shape_cast %323 : vector<8xf32> to vector<8x1xf32>
    %cst_129 = arith.constant 0.001953125 : f32
    %325 = vector.broadcast %cst_129 : f32 to vector<8x1xf32>
    %326 = arith.mulf %321, %325 : vector<8x1xf32>
    %cst_130 = arith.constant 0.001953125 : f32
    %327 = vector.broadcast %cst_130 : f32 to vector<8x1xf32>
    %328 = arith.mulf %324, %327 : vector<8x1xf32>
    %329 = arith.mulf %326, %326 : vector<8x1xf32>
    %330 = arith.subf %328, %329 : vector<8x1xf32>
    %c0_131 = arith.constant 0 : index
    %c0_132 = arith.constant 0 : index
    %331 = vector.load %arg10[%c0_131, %c0_132] : memref<8x1xf32, #tpu.memory_space<vmem>>, vector<8x1xf32>
    %cst_133 = arith.constant 2.000000e-05 : f32
    %332 = vector.broadcast %cst_133 : f32 to vector<8x1xf32>
    %333 = arith.addf %330, %332 : vector<8x1xf32>
    %334 = math.rsqrt %333 : vector<8x1xf32>
    %335 = arith.mulf %331, %334 : vector<8x1xf32>
    %c0_134 = arith.constant 0 : index
    %c0_135 = arith.constant 0 : index
    %336 = vector.load %arg11[%c0_134, %c0_135] : memref<8x1xf32, #tpu.memory_space<vmem>>, vector<8x1xf32>
    %337 = arith.mulf %326, %335 : vector<8x1xf32>
    %338 = arith.subf %336, %337 : vector<8x1xf32>
    %339 = vector.broadcast %335 : vector<8x1xf32> to vector<8x512xf32>
    %340 = arith.mulf %319, %339 : vector<8x512xf32>
    %341 = vector.broadcast %338 : vector<8x1xf32> to vector<8x512xf32>
    %342 = arith.addf %340, %341 : vector<8x512xf32>
    %343 = arith.addf %342, %0 : vector<8x512xf32>
    %c0_136 = arith.constant 0 : index
    %c0_137 = arith.constant 0 : index
    %344 = vector.load %arg12[%c0_136, %c0_137] : memref<8x512xf32, #tpu.memory_space<vmem>>, vector<8x512xf32>
    tpu.vector_store %arg12[%c0_136, %c0_137], %343 {strides = array<i32>} : memref<8x512xf32, #tpu.memory_space<vmem>>, vector<8x512xf32>,
    return
  }
}

</mosaic_0001>

<bundles_post_ra>
// kernel: tpu_custom_call.1
= control target key start
LH: loop header
LB: loop body
LE: loop exit
PB: predicated region body
PF: predicated region fallthrough
CT: control target
= control target key end

     0   :  { %s2086_s0 = inlined_call_operand.vmem [shape: f32[8,512], index: 0, kind: input, shape index: {}]   ;;  %s2087_s1 = inlined_call_operand.vmem [shape: s32[1,512], index: 1, kind: input, shape index: {}]   ;;  %s2088_s2 = inlined_call_operand.vmem [shape: s32[1,512], index: 2, kind: input, shape index: {}]   ;;  %s2089_s3 = inlined_call_operand.vmem [shape: f32[8,1], index: 3, kind: input, shape index: {}]   ;;  %s2090_s4 = inlined_call_operand.vmem [shape: f32[8,1], index: 4, kind: input, shape index: {}]   ;;  %s2091_s5 = inlined_call_operand.vmem [shape: f32[8,72], index: 5, kind: input, shape index: {}]   ;;  %s2092_s6 = inlined_call_operand.vmem [shape: f32[8,1], index: 6, kind: input, shape index: {}]   ;;  %s2093_s7 = inlined_call_operand.vmem [shape: f32[8,1], index: 7, kind: input, shape index: {}]   ;;  %s2094_s8 = inlined_call_operand.vmem [shape: f32[8,1], index: 8, kind: input, shape index: {}]   ;;  %s2095_s9 = inlined_call_operand.vmem [shape: f32[8,72], index: 9, kind: input, shape index: {}]   ;;  %s2096_s10 = inlined_call_operand.vmem [shape: f32[8,1], index: 10, kind: input, shape index: {}]   ;;  %s2097_s11 = inlined_call_operand.vmem [shape: f32[8,1], index: 11, kind: input, shape index: {}]   ;;  %s2098_s12 = inlined_call_operand.hbm [shape: f32[8,512], index: 12, kind: output, shape index: {}]  }
   0x1   :  { %v42_v0 = vld [vmem:[%s2086_s0] sm:$0xff]  ;;  %v43_v1 = vld [vmem:[%s2086_s0 + $0x8] sm:$0xff]  ;;  %v44_v2 = vld [vmem:[%s2086_s0 + $0x10] sm:$0xff] }
   0x2   :  { %v85_v3 = vadd.f32 %v43_v1, %v42_v0  ;;  %v90_v4 = vmul.f32 %v42_v0, %v42_v0  ;;  %v91_v5 = vmul.f32 %v43_v1, %v43_v1  ;;  %v92_v6 = vmul.f32 %v44_v2, %v44_v2 }
   0x3   :  { %17 = vsyncpa [#allocation3], 0  ;;  %v45_v7 = vld [vmem:[%s2086_s0 + $0x18] sm:$0xff]  ;;  %v1131_v14 = vmov 0   ;;  %v103_v22 = vld [vmem:[%s2089_s3] sm:$0xff]  ;;  %s1132_s3 = smov 111   ;;  %v137_v44 = vlaneseq }
   0x4   :  { %v86_v8 = vadd.f32 %v85_v3, %v44_v2  ;;  %v93_v9 = vmul.f32 %v45_v7, %v45_v7  ;;  %v94_v10 = vadd.f32 %v91_v5, %v90_v4  ;;  %1097 = vset.pattern.permute.xlu1 %v1131_v14  ;;  %1098 = vset.pattern.permute.xlu0 %v1131_v14  ;;  %v107_v25 = vld [vmem:[%s2090_s4] sm:$0xff]  ;;  %s1133_s4 = smov 113   ;;  %s1134_s15 = smov 112   ;;  %v1140_v38 = vmov 0.0  }
   0x5   :  { %s1135_s16 = smov 127   ;;  %s1136_s17 = smov 1   ;;  %528 = vmatprep.mubr.f32.mxu0 %v1140_v38  ;;  %599 = vmatprep.mubr.f32.mxu1 %v1140_v38  ;;  %v1304_v39 = vld [vmem:[%s2087_s1] sm:$0xf]  ;;  %v146_v45 = vshrl.u32 %v137_v44, 7  ;;  %v1332_v48 = vand.u32 127, %v137_v44 }
   0x6   :  { %v87_v11 = vadd.f32 %v86_v8, %v45_v7  ;;  %v95_v12 = vadd.f32 %v94_v10, %v92_v6  ;;  %s1137_s18 = smov 15   ;;  %s1138_s19 = smov 16   ;;  %v1309_v40 = vld [vmem:[%s2088_s2] sm:$0xf]  ;;  %v75_v41 = vadd.s32 1, %v1304_v39 }
   0x7   :  { %s1139_s20 = smov 17   ;;  %v1313_v42 = vadd.s32 1, %v1309_v40  ;;  %v1327_v46 = vsub.s32 1, %v146_v45  ;;  %v1336_v50 = vsub.s32 0, %v146_v45  ;;  %vm2101_vm7 = vcmp.ge.s32.totalorder %v1309_v40, 0  ;;  %s1141_s14 = smov [#allocation2]  }
   0x8   :  { %88 = vadd.xlane.f32.xlu0 %v87_v11  ;;  %v96_v13 = vadd.f32 %v95_v12, %v93_v9  ;;  %vm76_vm0 = vcmp.ge.s32.totalorder %v75_v41, 0  ;;  %vm77_vm1 = vcmp.lt.s32.totalorder %v75_v41, 16  ;;  %vm2103_vm8 = vcmp.lt.s32.totalorder %v1332_v48, 111 }
   0x9   :  { %vm2099_vm2 = vcmp.ge.s32.totalorder %v1313_v42, 0  ;;  %vm1316_vm3 = vmand %vm76_vm0, %vm77_vm1  ;;  %vm2106_vm4 = vcmp.lt.s32.totalorder %v1313_v42, 16  ;;  %vm2104_vm9 = vcmp.lt.s32.totalorder %v1309_v40, 16  ;;  %v1352_v53 = vadd.s32 4294967295, %v1309_v40 }
   0xa   :  { %vm83_vm5 = vmand %vm1316_vm3, %vm2099_vm2  ;;  %vm66_vm1 = vcmp.ge.s32.totalorder %v1304_v39, 0  ;;  %v1423_v10 = vsub.s32 3, %v146_v45 }
   0xb   :  { %vm84_vm6 = vmand %vm83_vm5, %vm2106_vm4  ;;  %vm2105_vm14 = vcmp.ge.s32.totalorder %v1352_v53, 0  ;;  %vm2100_vm15 = vcmp.lt.s32.totalorder %v1352_v53, 16  ;;  %vm67_vm5 = vcmp.lt.s32.totalorder %v1304_v39, 16 }
   0xc   :  { %97 = vadd.xlane.f32.xlu0 %v96_v13  ;;  %v1330_v47 = vsel %vm84_vm6, 1, %v1131_v14  ;;  %vm81_vm10 = vmand %vm1316_vm3, %vm2101_vm7 }
   0xd   :  { %v443_v49 = vrot.slane %v1330_v47, %v1327_v46  ;;  %v439_v52 = vrot.slane %v1330_v47, %v1336_v50  ;;  %vm82_vm12 = vmand %vm81_vm10, %vm2104_vm9  ;;  %vm2102_vm10 = vcmp.lt.s32.totalorder %v1332_v48, 112 }
   0xe   :  { %v1371_v60 = vsel %vm82_vm12, 1, %v1131_v14  ;;  %vm79_vm0 = vmand %vm1316_vm3, %vm2105_vm14 }
   0xf   :  { %vm1345_vm11 = vcmp.eq.s32.totalorder %v443_v49, 1  ;;  %vm1363_vm13 = vcmp.eq.s32.totalorder %v439_v52, 1  ;;  %v405_v62 = vrot.slane %v1371_v60, %v1327_v46  ;;  %vm80_vm6 = vmand %vm79_vm0, %vm2100_vm15  ;;  %v2159_v52 = vmov 0 }
  0x10   :  { %vm1397_vm3 = vmand %vm66_vm1, %vm67_vm5  ;;  %v1406_v6 = vsel %vm80_vm6, 1, %v1131_v14 }
  0x11   :  { %vm1391_vm12 = vcmp.eq.s32.totalorder %v405_v62, 1  ;;  %vm73_vm0 = vmand %vm1397_vm3, %vm2099_vm2  ;;  %v367_v9 = vrot.slane %v1406_v6, %v1327_v46  ;;  %v363_v13 = vrot.slane %v1406_v6, %v1336_v50  ;;  %vm2107_vm2 = vcmp.lt.s32.totalorder %v1332_v48, 113 }
  0x12   :  { %vm71_vm5 = vmand %vm1397_vm3, %vm2101_vm7  ;;  %v2166_v62 = vmov 0 }
  0x13   :  { %vm74_vm6 = vmand %vm73_vm0, %vm2106_vm4  ;;  %vm1442_vm15 = vcmp.eq.s32.totalorder %v367_v9, 1 }
  0x14   :  { %vm72_vm7 = vmand %vm71_vm5, %vm2104_vm9 }
  0x91   :  { %v89_v15 = vpop.xlane.xlu0 %88 }
  0x92   :  { %v99_v16 = vmul.f32 0.001953125, %v89_v15  ;;  %v1429_v15 = vsub.s32 2, %v146_v45 }
  0x94   :  { %v101_v18 = vmul.f32 %v99_v16, %v99_v16  ;;  %v371_v9 = vrot.slane %v1406_v6, %v1429_v15 }
  0x95   :  { %v98_v17 = vpop.xlane.xlu0 %97 }
  0x96   :  { %v100_v19 = vmul.f32 0.001953125, %v98_v17  ;;  %v2149_v17 = vmov 0 }
  0x97   :  { %v2150_v17 = vsel %vm1442_vm15, 4294967295, %v2149_v17 }
  0x98   :  { %v102_v20 = vsub.f32 %v100_v19, %v101_v18  ;;  %v451_v18 = vrot.slane %v1330_v47, %v1423_v10 }
  0x9a   :  { %v104_v21 = vadd.f32 2e-05, %v102_v20  ;;  %vm1474_vm0 = vcmp.eq.s32.totalorder %v451_v18, 1 }
  0x9c   :  { %1099 = vrsqrt.f32 %v104_v21  ;;  %v2151_v21 = vmov 0 }
  0xa9   :  { %v1100_v23 = vpop.eup %1099 }
  0xaa   :  { %v106_v24 = vmul.f32 %v1100_v23, %v103_v22  ;;  %v447_v22 = vrot.slane %v1330_v47, %v1429_v15  ;;  %v1459_v23 = vsel %vm74_vm6, 1, %v1131_v14  ;;  %vm2110_vm6 = vcmp.lt.s32.totalorder %v1332_v48, 127 }
  0xab   :  { %v413_v47 = vrot.slane %v1371_v60, %v1423_v10 }
  0xac   :  { %112 = vperm.xlu1 %1097, %v106_v24   ;;  %v108_v26 = vmul.f32 %v106_v24, %v99_v16  ;;  %vm1482_vm5 = vcmp.eq.s32.totalorder %v447_v22, 1 }
  0xae   :  { %v109_v27 = vsub.f32 %v107_v25, %v108_v26  ;;  %v1470_v26 = vsel %vm72_vm7, 1, %v1131_v14  ;;  %vm69_vm7 = vmand %vm1397_vm3, %vm2105_vm14 }
  0xaf   :  { %v291_v44 = vrot.slane %v1470_v26, %v1327_v46  ;;  %v287_v45 = vrot.slane %v1470_v26, %v1336_v50 }
  0xb0   :  { %121 = vperm.xlu1 %1097, %v109_v27   ;;  %v2153_v27 = vmov 0 }
  0xb1   :  { %v2154_v27 = vsel %vm1474_vm0, 4294967295, %v2153_v27  ;;  %vm1525_vm4 = vcmp.eq.s32.totalorder %v291_v44, 1 }
 0x127   :  { %v113_v28 = vpop.permute.xlu1 %112 }
 0x128   :  { %v116_v29 = vmul.f32 %v113_v28, %v43_v1  ;;  %v117_v30 = vmul.f32 %v113_v28, %v44_v2  ;;  %v115_v34 = vmul.f32 %v113_v28, %v42_v0  ;;  %v118_v36 = vmul.f32 %v113_v28, %v45_v7 }
 0x129   :  { %v401_v2 = vrot.slane %v1371_v60, %v1336_v50  ;;  %v329_v28 = vrot.slane %v1459_v23, %v1327_v46 }
 0x12b   :  { %v122_v31 = vpop.permute.xlu1 %121  ;;  %vm1417_vm1 = vcmp.eq.s32.totalorder %v401_v2, 1 }
 0x12c   :  { %v1227_v32 = vadd.f32 %v122_v31, %v116_v29  ;;  %v1229_v33 = vadd.f32 %v122_v31, %v117_v30  ;;  %v1235_v35 = vadd.f32 %v122_v31, %v115_v34  ;;  %v1257_v37 = vadd.f32 %v122_v31, %v118_v36 }
 0x12d   :  { %v2155_v31 = vmov 0  ;;  %v325_v34 = vrot.slane %v1459_v23, %v1336_v50  ;;  %v48_v36 = vadd.s32 4294967295, %v1304_v39  ;;  %v2157_v39 = vmov 0 }
 0x12e   :  { %426 = vrot.lane.b32.xlu1 %v1229_v33, %s1132_s3  ;;  %424 = vrot.lane.b32.xlu0 %v1227_v32, %s1132_s3  ;;  %v2156_v31 = vsel %vm1482_vm5, 4294967295, %v2155_v31 }
 0x12f   :  { %vm1513_vm9 = vcmp.eq.s32.totalorder %v325_v34, 1  ;;  %vm49_vm3 = vcmp.ge.s32.totalorder %v48_v36, 0  ;;  %vm50_vm14 = vcmp.lt.s32.totalorder %v48_v36, 16 }
 0x130   :  { %v2160_v52 = vsel %vm1513_vm9, 4294967295, %v2159_v52 }
 0x132   :  { %350 = vrot.lane.b32.xlu0 %v1229_v33, %s1133_s4  ;;  %422 = vrot.lane.b32.xlu1 %v1235_v35, %s1132_s3 }
 0x136   :  { %346 = vrot.lane.b32.xlu0 %v1235_v35, %s1133_s4  ;;  %386 = vrot.lane.b32.xlu1 %v1227_v32, %s1134_s15 }
 0x13a   :  { %312 = vrot.lane.b32.xlu0 %v1229_v33, %s1135_s16  ;;  %388 = vrot.lane.b32.xlu1 %v1229_v33, %s1134_s15 }
 0x13e   :  { %308 = vrot.lane.b32.xlu0 %v1235_v35, %s1135_s16  ;;  %384 = vrot.lane.b32.xlu1 %v1235_v35, %s1134_s15 }
 0x142   :  { %245 = vrot.lane.b32.xlu0 %v1235_v35, %s1136_s17  ;;  %348 = vrot.lane.b32.xlu1 %v1227_v32, %s1133_s4 }
 0x146   :  { %314 = vrot.lane.b32.xlu0 %v1257_v37, %s1135_s16  ;;  %428 = vrot.lane.b32.xlu1 %v1257_v37, %s1132_s3 }
 0x14a   :  { %207 = vrot.lane.b32.xlu0 %v1235_v35, %s1137_s18  ;;  %310 = vrot.lane.b32.xlu1 %v1227_v32, %s1135_s16 }
 0x14e   :  { %213 = vrot.lane.b32.xlu0 %v1257_v37, %s1137_s18  ;;  %390 = vrot.lane.b32.xlu1 %v1257_v37, %s1134_s15 }
 0x152   :  { %171 = vrot.lane.b32.xlu0 %v1227_v32, %s1138_s19  ;;  %352 = vrot.lane.b32.xlu1 %v1257_v37, %s1133_s4 }
 0x156   :  { %175 = vrot.lane.b32.xlu0 %v1257_v37, %s1138_s19  ;;  %247 = vrot.lane.b32.xlu1 %v1227_v32, %s1136_s17 }
 0x15a   :  { %131 = vrot.lane.b32.xlu0 %v1227_v32, %s1139_s20  ;;  %251 = vrot.lane.b32.xlu1 %v1257_v37, %s1136_s17 }
 0x15e   :  { %135 = vrot.lane.b32.xlu0 %v1257_v37, %s1139_s20  ;;  %209 = vrot.lane.b32.xlu1 %v1227_v32, %s1137_s18 }
 0x162   :  { %133 = vrot.lane.b32.xlu0 %v1229_v33, %s1139_s20  ;;  %169 = vrot.lane.b32.xlu1 %v1235_v35, %s1138_s19 }
 0x166   :  { %249 = vrot.lane.b32.xlu1 %v1229_v33, %s1136_s17 }
 0x16a   :  { %129 = vrot.lane.b32.xlu1 %v1235_v35, %s1139_s20 }
 0x16e   :  { %211 = vrot.lane.b32.xlu1 %v1229_v33, %s1137_s18 }
 0x172   :  { %173 = vrot.lane.b32.xlu1 %v1229_v33, %s1138_s19 }
 0x1a0   :  { %v1354_v54 = vpop.permute.xlu1 %426  ;;  %v425_v55 = vpop.permute.xlu0 %424 }
 0x1a1   :  { %v432_v56 = vsel %vm2103_vm8, %v425_v55, %v1354_v54 }
 0x1a2   :  { %1010 = vmatprep.subr.msk.mxu0 %vm1345_vm11, %v432_v56 }
 0x1a4   :  { %v1368_v58 = vpop.permute.xlu0 %350  ;;  %v423_v59 = vpop.permute.xlu1 %422 }
 0x1a5   :  { %v433_v61 = vsel %vm2103_vm8, %v423_v59, %v425_v55 }
 0x1a6   :  { %1011 = vmatpush1.msk.msra.mxu0 %vm1363_vm13, %v433_v61 }
 0x1a8   :  { %v1384_v63 = vpop.permute.xlu0 %346  ;;  %v387_v0 = vpop.permute.xlu1 %386 }
 0x1ac   :  { %v1401_v4 = vpop.permute.xlu0 %312  ;;  %v1403_v5 = vpop.permute.xlu1 %388 }
 0x1ad   :  { %v394_v7 = vsel %vm2102_vm10, %v387_v0, %v1403_v5 }
 0x1ae   :  { %1012 = vmatprep.subr.msk.mxu0 %vm1391_vm12, %v394_v7  ;;  %v2170_v7 = vmov 0 }
 0x1b0   :  { %v1425_v11 = vpop.permute.xlu0 %308  ;;  %v385_v12 = vpop.permute.xlu1 %384 }
 0x1b1   :  { %v395_v16 = vsel %vm2102_vm10, %v385_v12, %v387_v0  ;;  %vm1452_vm10 = vcmp.eq.s32.totalorder %v363_v13, 1  ;;  %v375_v0 = vrot.slane %v1406_v6, %v1423_v10  ;;  %v333_v6 = vrot.slane %v1459_v23, %v1429_v15 }
 0x1b2   :  { %1013 = vmatpush1.msk.msra.mxu0 %vm1417_vm1, %v395_v16  ;;  %v2152_v21 = vsel %vm1452_vm10, 4294967295, %v2151_v21 }
 0x1b4   :  { %v1450_v19 = vpop.permute.xlu0 %245  ;;  %v349_v20 = vpop.permute.xlu1 %348 }
 0x1b5   :  { %v356_v24 = vsel %vm2107_vm2, %v349_v20, %v1368_v58  ;;  %v357_v25 = vsel %vm2107_vm2, %v1384_v63, %v349_v20  ;;  %vm2163_vm2 = vcmp.lt.s32.totalorder %v1352_v53, 16 }
 0x1b6   :  { %1014 = vmatprep.subr.msk.mxu0 %vm1442_vm15, %v356_v24  ;;  %v295_v24 = vrot.slane %v1470_v26, %v1429_v15  ;;  %vm2187_vm15 = vcmp.lt.s32.totalorder %v1332_v48, 127 }
 0x1b7   :  { %1015 = vmatpush1.msk.msra.mxu0 %vm1452_vm10, %v357_v25  ;;  %vm1614_vm10 = vcmp.eq.s32.totalorder %v333_v6, 1 }
 0x1b8   :  { %v1480_v29 = vpop.permute.xlu0 %314  ;;  %v429_v30 = vpop.permute.xlu1 %428 }
 0x1b9   :  { %v434_v41 = vsel %vm2103_vm8, %v429_v30, %v423_v59  ;;  %v431_v43 = vsel %vm2103_vm8, %v1354_v54, %v429_v30  ;;  %vm1507_vm8 = vcmp.eq.s32.totalorder %v329_v28, 1  ;;  %v409_v54 = vrot.slane %v1371_v60, %v1429_v15 }
 0x1ba   :  { %1029 = vmatprep.subr.msk.mxu1 %vm1474_vm0, %v434_v41  ;;  %v2158_v39 = vsel %vm1507_vm8, 4294967295, %v2157_v39  ;;  %v2161_v59 = vmov 0  ;;  %vm1535_vm0 = vcmp.eq.s32.totalorder %v287_v45, 1  ;;  %v2164_v60 = vmov 0 }
 0x1bb   :  { %1030 = vmatpush1.msk.msra.mxu1 %vm1482_vm5, %v431_v43  ;;  %v2162_v59 = vsel %vm1525_vm4, 4294967295, %v2161_v59  ;;  %vm70_vm5 = vmand %vm69_vm7, %vm2163_vm2  ;;  %v2165_v60 = vsel %vm1535_vm0, 4294967295, %v2164_v60  ;;  %vm1554_vm7 = vcmp.eq.s32.totalorder %v409_v54, 1  ;;  %v2193_v41 = vmov 0 }
 0x1bc   :  { %v311_v49 = vpop.permute.xlu1 %310  ;;  %v1531_v61 = vpop.permute.xlu0 %207  ;;  %vm1547_vm2 = vmand %vm49_vm3, %vm50_vm14  ;;  %v2171_v7 = vsel %vm1554_vm7, 4294967295, %v2170_v7  ;;  %v1561_v13 = vsel %vm70_vm5, 1, %v1131_v14  ;;  %vm2172_vm14 = vcmp.lt.s32.totalorder %v1332_v48, 112  ;;  %vm2174_vm5 = vcmp.ge.s32.totalorder %v1313_v42, 0 }
 0x1bd   :  { %v318_v55 = vsel %vm2110_vm6, %v311_v49, %v1401_v4  ;;  %v319_v56 = vsel %vm2110_vm6, %v1425_v11, %v311_v49  ;;  %vm1541_vm6 = vcmp.eq.s32.totalorder %v413_v47, 1  ;;  %vm2173_vm3 = vmmov %vm2172_vm14  ;;  %v262_v34 = vrot.slane %v1561_v13, %v1336_v50 }
 0x1be   :  { %1016 = vmatprep.subr.msk.mxu0 %vm1507_vm8, %v318_v55  ;;  %v2167_v62 = vsel %vm1541_vm6, 4294967295, %v2166_v62  ;;  %vm2122_vm8 = vcmp.lt.s32.totalorder %v1332_v48, 1 }
 0x1bf   :  { %1017 = vmatpush1.msk.msra.mxu0 %vm1513_vm9, %v319_v56 }
 0x1c0   :  { %1018 = vmatprep.subr.msk.mxu0 %vm1525_vm4, %v1227_v32  ;;  %v391_v3 = vpop.permute.xlu1 %390  ;;  %v337_v32 = vrot.slane %v1459_v23, %v1423_v10  ;;  %v1591_v20 = vpop.permute.xlu0 %213  ;;  %v2177_v23 = vmov 0  ;;  %vm2183_vm4 = vcmp.lt.s32.totalorder %v1313_v42, 16  ;;  %v320_v42 = vsel %vm2187_vm15, %v1480_v29, %v1425_v11 }
 0x1c1   :  { %v393_v16 = vsel %vm2172_vm14, %v1403_v5, %v391_v3  ;;  %v396_v18 = vsel %vm2173_vm3, %v391_v3, %v385_v12  ;;  %1019 = vmatpush1.msk.msra.mxu0 %vm1535_vm0, %v1235_v35  ;;  %vm63_vm14 = vmand %vm1547_vm2, %vm2174_vm5  ;;  %vm1583_vm3 = vcmp.eq.s32.totalorder %v375_v0, 1  ;;  %v266_v35 = vrot.slane %v1561_v13, %v1327_v46 }
 0x1c2   :  { %1031 = vmatprep.subr.msk.mxu1 %vm1541_vm6, %v396_v18  ;;  %v299_v12 = vrot.slane %v1470_v26, %v1423_v10  ;;  %vm1593_vm6 = vcmp.eq.s32.totalorder %v371_v9, 1  ;;  %vm2179_vm5 = vcmp.lt.s32.totalorder %v1332_v48, 113  ;;  %vm1605_vm0 = vcmp.eq.s32.totalorder %v337_v32, 1  ;;  %vm65_vm9 = vmand %vm63_vm14, %vm2183_vm4 }
 0x1c3   :  { %1032 = vmatpush1.msk.msra.mxu1 %vm1554_vm7, %v393_v16  ;;  %v2178_v23 = vsel %vm1593_vm6, 4294967295, %v2177_v23  ;;  %vm2180_vm7 = vmmov %vm2179_vm5  ;;  %vm1628_vm4 = vcmp.eq.s32.totalorder %v266_v35, 1  ;;  %v1649_v43 = vsel %vm65_vm9, 1, %v1131_v14  ;;  %vm1668_vm9 = vcmp.eq.s32.totalorder %v262_v34, 1 }
 0x1c4   :  { %v353_v22 = vpop.permute.xlu1 %352  ;;  %vm1632_vm14 = vcmp.eq.s32.totalorder %v299_v12, 1  ;;  %v224_v47 = vrot.slane %v1649_v43, %v1336_v50  ;;  %v2204_v9 = vmov 0  ;;  %v2206_v18 = vmov 0 }
 0x1c5   :  { %v355_v25 = vsel %vm2179_vm5, %v1368_v58, %v353_v22  ;;  %v358_v28 = vsel %vm2180_vm7, %v353_v22, %v1384_v63  ;;  %vm2186_vm5 = vcmp.ge.s32.totalorder %v1309_v40, 0  ;;  %v2190_v63 = vmov 0 }
 0x1c6   :  { %1033 = vmatprep.subr.msk.mxu1 %vm1583_vm3, %v358_v28  ;;  %vm58_vm7 = vmand %vm1547_vm2, %vm2186_vm5  ;;  %v2191_v63 = vsel %vm1632_vm14, 4294967295, %v2190_v63  ;;  %v2208_v22 = vmov 0  ;;  %v236_v34 = vrot.slane %v1649_v43, %v1423_v10 }
 0x1c7   :  { %1034 = vmatpush1.msk.msra.mxu1 %vm1593_vm6, %v355_v25  ;;  %vm2192_vm5 = vmmov %vm2187_vm15  ;;  %vm1644_vm15 = vcmp.eq.s32.totalorder %v295_v24, 1  ;;  %v2210_v24 = vmov 0 }
 0x1c8   :  { %v317_v36 = vsel %vm2192_vm5, %v1401_v4, %v1480_v29  ;;  %1035 = vmatprep.subr.msk.mxu1 %vm1605_vm0, %v320_v42  ;;  %v248_v11 = vpop.permute.xlu1 %247  ;;  %v2194_v41 = vsel %vm1644_vm15, 4294967295, %v2193_v41  ;;  %vm2195_vm5 = vcmp.lt.s32.totalorder %v1309_v40, 16  ;;  %v1658_v4 = vpop.permute.xlu0 %171  ;;  %v2196_v29 = vmov 0 }
 0x1c9   :  { %v256_v44 = vsel %vm2122_vm8, %v1450_v19, %v248_v11  ;;  %1036 = vmatpush1.msk.msra.mxu1 %vm1614_vm10, %v317_v36  ;;  %vm60_vm6 = vmand %vm58_vm7, %vm2195_vm5  ;;  %v2197_v29 = vsel %vm1668_vm9, 4294967295, %v2196_v29  ;;  %v228_v40 = vrot.slane %v1649_v43, %v1327_v46  ;;  %vm2198_vm7 = vcmp.ge.s32.totalorder %v1352_v53, 0 }
 0x1ca   :  { %1020 = vmatprep.subr.msk.mxu0 %vm1628_vm4, %v256_v44  ;;  %1037 = vmatprep.subr.msk.mxu1 %vm1632_vm14, %v1257_v37  ;;  %v1677_v49 = vsel %vm60_vm6, 1, %v1131_v14  ;;  %vm54_vm5 = vmand %vm1547_vm2, %vm2198_vm7  ;;  %vm1695_vm6 = vcmp.eq.s32.totalorder %v224_v47, 1  ;;  %vm2203_vm2 = vcmp.lt.s32.totalorder %v1352_v53, 16  ;;  %v274_v53 = vrot.slane %v1561_v13, %v1423_v10  ;;  %v128_v47 = vld [vmem:[%s2091_s5] sm:$0xff] }
 0x1cb   :  { %1038 = vmatpush1.msk.msra.mxu1 %vm1644_vm15, %v1229_v33  ;;  %vm2125_vm15 = vcmp.lt.s32.totalorder %v1332_v48, 15  ;;  %vm1689_vm14 = vcmp.eq.s32.totalorder %v228_v40, 1  ;;  %v190_v54 = vrot.slane %v1677_v49, %v1327_v46  ;;  %v186_v0 = vrot.slane %v1677_v49, %v1336_v50  ;;  %vm56_vm7 = vmand %vm54_vm5, %vm2203_vm2 }
 0x1cc   :  { %v252_v45 = vpop.permute.xlu1 %251  ;;  %v176_v55 = vpop.permute.xlu0 %175  ;;  %v219_v3 = vsel %vm2125_vm15, %v1591_v20, %v1531_v61  ;;  %v144_v32 = vsel %vm56_vm7, 1, %v1131_v14  ;;  %vm1737_vm2 = vcmp.eq.s32.totalorder %v274_v53, 1  ;;  %v2216_v44 = vmov 0 }
 0x1cd   :  { %v257_v37 = vsel %vm2122_vm8, %v252_v45, %v1450_v19  ;;  %v2201_v19 = vmov 0  ;;  %vm2124_vm8 = vcmp.lt.s32.totalorder %v1332_v48, 16  ;;  %vm1721_vm5 = vcmp.eq.s32.totalorder %v186_v0, 1 }
 0x1ce   :  { %1021 = vmatpush1.msk.msra.mxu0 %vm1668_vm9, %v257_v37  ;;  %v2202_v19 = vsel %vm1695_vm6, 4294967295, %v2201_v19  ;;  %vm1715_vm9 = vcmp.eq.s32.totalorder %v190_v54, 1  ;;  %v2207_v18 = vsel %vm1721_vm5, 4294967295, %v2206_v18  ;;  %v2209_v22 = vsel %vm1737_vm2, 4294967295, %v2208_v22 }
 0x1cf   :  { %v2205_v9 = vsel %vm1715_vm9, 4294967295, %v2204_v9  ;;  %v152_v14 = vrot.slane %v144_v32, %v1327_v46  ;;  %v148_v25 = vrot.slane %v144_v32, %v1336_v50  ;;  %v2214_v46 = vmov 0 }
 0x1d0   :  { %v210_v56 = vpop.permute.xlu1 %209  ;;  %v132_v12 = vpop.permute.xlu0 %131  ;;  %v2218_v37 = vmov 0  ;;  %v2220_v0 = vmov 0 }
 0x1d1   :  { %v218_v2 = vsel %vm2125_vm15, %v1531_v61, %v210_v56  ;;  %v270_v61 = vrot.slane %v1561_v13, %v1429_v15 }
 0x1d2   :  { %1022 = vmatprep.subr.msk.mxu0 %vm1689_vm14, %v218_v2  ;;  %v194_v2 = vrot.slane %v1677_v49, %v1429_v15 }
 0x1d3   :  { %1023 = vmatpush1.msk.msra.mxu0 %vm1695_vm6, %v219_v3  ;;  %vm1742_vm7 = vcmp.eq.s32.totalorder %v270_v61, 1  ;;  %v156_v61 = vrot.slane %v144_v32, %v1429_v15  ;;  %vm2234_vm6 = vcmp.lt.s32.totalorder %v1332_v48, 17 }
 0x1d4   :  { %v170_v16 = vpop.permute.xlu1 %169  ;;  %v2211_v24 = vsel %vm1742_vm7, 4294967295, %v2210_v24  ;;  %v136_v50 = vpop.permute.xlu0 %135 }
 0x1d5   :  { %v180_v6 = vsel %vm2124_vm8, %v170_v16, %v1658_v4  ;;  %v181_v35 = vsel %vm2124_vm8, %v176_v55, %v170_v16  ;;  %vm2212_vm8 = vcmp.lt.s32.totalorder %v1332_v48, 1  ;;  %v160_v16 = vrot.slane %v144_v32, %v1423_v10 }
 0x1d6   :  { %1024 = vmatprep.subr.msk.mxu0 %vm1715_vm9, %v180_v6  ;;  %vm2213_vm15 = vmmov %vm2212_vm8  ;;  %vm2129_vm9 = vcmp.lt.s32.totalorder %v1332_v48, 17 }
 0x1d7   :  { %1025 = vmatpush1.msk.msra.mxu0 %vm1721_vm5, %v181_v35  ;;  %vm1755_vm5 = vcmp.eq.s32.totalorder %v152_v14, 1 }
 0x1d8   :  { %v250_v13 = vpop.permute.xlu1 %249  ;;  %v2215_v46 = vsel %vm1755_vm5, 4294967295, %v2214_v46 }
 0x1d9   :  { %v254_v28 = vsel %vm2212_vm8, %v250_v13, %v252_v45  ;;  %v255_v42 = vsel %vm2213_vm15, %v248_v11, %v250_v13  ;;  %vm1762_vm8 = vcmp.eq.s32.totalorder %v148_v25, 1  ;;  %v232_v11 = vrot.slane %v1649_v43, %v1429_v15 }
 0x1da   :  { %1039 = vmatprep.subr.msk.mxu1 %vm1737_vm2, %v254_v28  ;;  %v2217_v44 = vsel %vm1762_vm8, 4294967295, %v2216_v44  ;;  %vm2132_vm15 = vcmask 588800   ;;  %v198_v43 = vrot.slane %v1677_v49, %v1423_v10  ;;  %vm1817_vm2 = vcmp.eq.s32.totalorder %v160_v16, 1 }
 0x1db   :  { %1040 = vmatpush1.msk.msra.mxu1 %vm1742_vm7, %v255_v42  ;;  %vm1779_vm7 = vcmp.eq.s32.totalorder %v236_v34, 1 }
 0x1dc   :  { %v130_v36 = vpop.permute.xlu1 %129  ;;  %v2219_v37 = vsel %vm1779_vm7, 4294967295, %v2218_v37 }
 0x1dd   :  { %v142_v40 = vsel %vm2129_vm9, %v130_v36, %v132_v12  ;;  %v143_v45 = vsel %vm2129_vm9, %v136_v50, %v130_v36  ;;  %vm1785_vm9 = vcmp.eq.s32.totalorder %v232_v11, 1 }
 0x1de   :  { %1026 = vmatprep.subr.msk.mxu0 %vm1755_vm5, %v142_v40  ;;  %v2221_v0 = vsel %vm1785_vm9, 4294967295, %v2220_v0 }
 0x1df   :  { %1027 = vmatpush1.msk.msra.mxu0 %vm1762_vm8, %v143_v45  ;;  %vm2222_vm8 = vcmp.lt.s32.totalorder %v1332_v48, 15 }
 0x1e0   :  { %v212_v54 = vpop.permute.xlu1 %211  ;;  %1028 = vmatmul.mubr.msk.f32.vlgmr.msra.gmra.mxu0 %vm2132_vm15, %v128_v47  ;;  %vm2223_vm5 = vmmov %vm2222_vm8  ;;  %vm1804_vm15 = vcmp.eq.s32.totalorder %v198_v43, 1 }
 0x1e1   :  { %v216_v3 = vsel %vm2222_vm8, %v212_v54, %v1591_v20  ;;  %v217_v53 = vsel %vm2223_vm5, %v210_v56, %v212_v54  ;;  %867 = vmatprep.mubr.f32.mxu0 %v1140_v38  ;;  %v134_v20 = vpop.permute.xlu0 %133  ;;  %vm1808_vm8 = vcmp.eq.s32.totalorder %v194_v2, 1  ;;  %vm2228_vm5 = vcmp.lt.s32.totalorder %v1332_v48, 16 }
 0x1e2   :  { %1041 = vmatprep.subr.msk.mxu1 %vm1779_vm7, %v216_v3  ;;  %vm2229_vm7 = vmmov %vm2228_vm5  ;;  %v140_v14 = vsel %vm2234_vm6, %v134_v20, %v136_v50 }
 0x1e3   :  { %1042 = vmatpush1.msk.msra.mxu1 %vm1785_vm9, %v217_v53  ;;  %vm1823_vm9 = vcmp.eq.s32.totalorder %v156_v61, 1 }
 0x1e4   :  { %v174_v6 = vpop.permute.xlu1 %173 }
 0x1e5   :  { %v178_v10 = vsel %vm2228_vm5, %v174_v6, %v176_v55  ;;  %v179_v15 = vsel %vm2229_vm7, %v1658_v4, %v174_v6  ;;  %vm2235_vm5 = vmmov %vm2234_vm6  ;;  %vm2236_vm7 = vcmask 588800  }
 0x1e6   :  { %1043 = vmatprep.subr.msk.mxu1 %vm1804_vm15, %v178_v10  ;;  %v141_v4 = vsel %vm2235_vm5, %v132_v12, %v134_v20  ;;  %v624_v20 = vld [vmem:[%s2092_s6] sm:$0xff] }
 0x1e7   :  { %1044 = vmatpush1.msk.msra.mxu1 %vm1808_vm8, %v179_v15  ;;  %v628_v15 = vld [vmem:[%s2093_s7] sm:$0xff] }
 0x1e8   :  { %1045 = vmatprep.subr.msk.mxu1 %vm1817_vm2, %v140_v14 }
 0x1e9   :  { %1046 = vmatpush1.msk.msra.mxu1 %vm1823_vm9, %v141_v4 }
 0x1ea   :  { %1047 = vmatmul.mubr.msk.f32.vlgmr.msra.gmra.mxu1 %vm2236_vm7, %v128_v47 }
 0x1eb   :  { %938 = vmatprep.mubr.f32.mxu1 %v1140_v38 }
 0x2a0   :  { %v530_v55 = vpop.f32.mrf.mxu0 }
 0x2a1   :  { %v611_v25 = vmul.f32 %v530_v55, %v530_v55 }
 0x2a2   :  { %v532_v13 = vpop.f32.mrf.mxu0 }
 0x2a3   :  { %v612_v28 = vmul.f32 %v532_v13, %v532_v13  ;;  %v606_v42 = vadd.f32 %v532_v13, %v530_v55 }
 0x2a5   :  { %v615_v11 = vadd.f32 %v612_v28, %v611_v25  ;;  %v653_v25 = vld [vmem:[%s2094_s8] sm:$0xff] }
 0x2aa   :  { %v601_v34 = vpop.f32.mrf.mxu1 }
 0x2ab   :  { %v613_v50 = vmul.f32 %v601_v34, %v601_v34  ;;  %v607_v36 = vadd.f32 %v606_v42, %v601_v34 }
 0x2ac   :  { %v603_v12 = vpop.f32.mrf.mxu1 }
 0x2ad   :  { %v608_v40 = vadd.f32 %v607_v36, %v603_v12  ;;  %v614_v45 = vmul.f32 %v603_v12, %v603_v12  ;;  %v616_v43 = vadd.f32 %v615_v11, %v613_v50 }
 0x2af   :  { %609 = vadd.xlane.f32.xlu1 %v608_v40  ;;  %v617_v54 = vadd.f32 %v616_v43, %v614_v45 }
 0x2b1   :  { %618 = vadd.xlane.f32.xlu0 %v617_v54 }
 0x338   :  { %v610_v2 = vpop.xlane.xlu1 %609 }
 0x339   :  { %v620_v47 = vmul.f32 0.001953125, %v610_v2 }
 0x33a   :  { %v619_v3 = vpop.xlane.xlu0 %618 }
 0x33b   :  { %v622_v38 = vmul.f32 %v620_v47, %v620_v47  ;;  %v621_v53 = vmul.f32 0.001953125, %v619_v3 }
 0x33d   :  { %v623_v16 = vsub.f32 %v621_v53, %v622_v38 }
 0x33f   :  { %v625_v61 = vadd.f32 2e-05, %v623_v16 }
 0x341   :  { %1101 = vrsqrt.f32 %v625_v61 }
 0x34e   :  { %v1102_v6 = vpop.eup %1101 }
 0x34f   :  { %v627_v10 = vmul.f32 %v1102_v6, %v624_v20 }
 0x351   :  { %633 = vperm.xlu0 %1098, %v627_v10   ;;  %v629_v14 = vmul.f32 %v627_v10, %v620_v47 }
 0x353   :  { %v630_v4 = vsub.f32 %v628_v15, %v629_v14 }
 0x355   :  { %642 = vperm.xlu1 %1097, %v630_v4  }
 0x359   :  { %656 = vperm.xlu1 %1097, %v653_v25  }
 0x3cc   :  { %v634_v28 = vpop.permute.xlu0 %633 }
 0x3cd   :  { %v636_v42 = vmul.f32 %v634_v28, %v530_v55  ;;  %v637_v50 = vmul.f32 %v634_v28, %v532_v13  ;;  %v638_v45 = vmul.f32 %v634_v28, %v601_v34  ;;  %v639_v13 = vmul.f32 %v634_v28, %v603_v12 }
 0x3d0   :  { %v643_v36 = vpop.permute.xlu1 %642 }
 0x3d1   :  { %v645_v11 = vadd.f32 %v643_v36, %v636_v42  ;;  %v646_v40 = vadd.f32 %v643_v36, %v637_v50  ;;  %v647_v54 = vadd.f32 %v643_v36, %v638_v45  ;;  %v648_v34 = vadd.f32 %v643_v36, %v639_v13 }
 0x3d3   :  { %vm649_vm6 = vcmp.ge.f32.partialorder %v645_v11, 0.0  ;;  %vm650_vm5 = vcmp.ge.f32.partialorder %v646_v40, 0.0  ;;  %vm651_vm7 = vcmp.ge.f32.partialorder %v647_v54, 0.0 }
 0x3d4   :  { %v657_v43 = vpop.permute.xlu1 %656 }
 0x3d5   :  { %v659_v2 = vmul.f32 %v657_v43, %v645_v11  ;;  %v660_v3 = vmul.f32 %v657_v43, %v646_v40  ;;  %v661_v47 = vmul.f32 %v657_v43, %v647_v54  ;;  %v662_v16 = vmul.f32 %v657_v43, %v648_v34 }
 0x3d7   :  { %v1848_v38 = vsel %vm649_vm6, %v645_v11, %v659_v2  ;;  %v1850_v53 = vsel %vm650_vm5, %v646_v40, %v660_v3  ;;  %v1856_v55 = vsel %vm651_vm7, %v647_v54, %v661_v47  ;;  %vm652_vm6 = vcmp.ge.f32.partialorder %v648_v34, 0.0 }
 0x3d8   :  { %786 = vrot.lane.b32.xlu1 %v1850_v53, %s1132_s3  ;;  %768 = vrot.lane.b32.xlu0 %v1848_v38, %s1134_s15  ;;  %v1878_v61 = vsel %vm652_vm6, %v648_v34, %v662_v16  ;;  %vm2237_vm5 = vcmp.lt.s32.totalorder %v1332_v48, 111  ;;  %vm2239_vm6 = vcmp.lt.s32.totalorder %v1332_v48, 112 }
 0x3d9   :  { %vm2238_vm7 = vmmov %vm2237_vm5 }
 0x3dc   :  { %788 = vrot.lane.b32.xlu1 %v1856_v55, %s1132_s3  ;;  %756 = vrot.lane.b32.xlu0 %v1856_v55, %s1133_s4 }
 0x3e0   :  { %752 = vrot.lane.b32.xlu0 %v1848_v38, %s1133_s4  ;;  %784 = vrot.lane.b32.xlu1 %v1848_v38, %s1132_s3 }
 0x3e4   :  { %740 = vrot.lane.b32.xlu0 %v1856_v55, %s1135_s16  ;;  %770 = vrot.lane.b32.xlu1 %v1850_v53, %s1134_s15 }
 0x3e8   :  { %736 = vrot.lane.b32.xlu0 %v1848_v38, %s1135_s16  ;;  %772 = vrot.lane.b32.xlu1 %v1856_v55, %s1134_s15 }
 0x3ec   :  { %716 = vrot.lane.b32.xlu0 %v1848_v38, %s1136_s17  ;;  %754 = vrot.lane.b32.xlu1 %v1850_v53, %s1133_s4 }
 0x3f0   :  { %742 = vrot.lane.b32.xlu0 %v1878_v61, %s1135_s16  ;;  %790 = vrot.lane.b32.xlu1 %v1878_v61, %s1132_s3  ;;  %s1002_s3 = sshll.u32 %s1141_s14, 4  ;;  %s1003_s3 = int_to_ptr.vmem [resolvable:$true] %s1002_s3 }
 0x3f1   :  { %p1114_p1 = scmp.lt.s32.totalorder %s1003_s3, %s1003_s3 }
 0x3f4   :  { %700 = vrot.lane.b32.xlu0 %v1848_v38, %s1137_s18  ;;  %738 = vrot.lane.b32.xlu1 %v1850_v53, %s1135_s16 }
 0x3f8   :  { %706 = vrot.lane.b32.xlu0 %v1878_v61, %s1137_s18  ;;  %774 = vrot.lane.b32.xlu1 %v1878_v61, %s1134_s15 }
 0x3fc   :  { %686 = vrot.lane.b32.xlu0 %v1850_v53, %s1138_s19  ;;  %758 = vrot.lane.b32.xlu1 %v1878_v61, %s1133_s4 }
 0x400   :  { %690 = vrot.lane.b32.xlu0 %v1878_v61, %s1138_s19  ;;  %718 = vrot.lane.b32.xlu1 %v1850_v53, %s1136_s17 }
 0x404   :  { %670 = vrot.lane.b32.xlu0 %v1850_v53, %s1139_s20  ;;  %722 = vrot.lane.b32.xlu1 %v1878_v61, %s1136_s17 }
 0x408   :  { %674 = vrot.lane.b32.xlu0 %v1878_v61, %s1139_s20  ;;  %702 = vrot.lane.b32.xlu1 %v1850_v53, %s1137_s18 }
 0x40c   :  { %672 = vrot.lane.b32.xlu0 %v1856_v55, %s1139_s20  ;;  %684 = vrot.lane.b32.xlu1 %v1848_v38, %s1138_s19 }
 0x410   :  { %720 = vrot.lane.b32.xlu1 %v1856_v55, %s1136_s17 }
 0x414   :  { %668 = vrot.lane.b32.xlu1 %v1848_v38, %s1139_s20  ;;  %s1109_s20 = scalar_lea.vmem %s1003_s3, 512 }
 0x415   :  { %p1110_p0 = scmp.ne.s32.totalorder %s1003_s3, %s1109_s20  ;;  %p1115_p2 = scmp.lt.s32.totalorder %s1109_s20, %s1109_s20 }
 0x417   :  { %p1116_p3 = por %p1115_p2, %p1114_p1 }
 0x418   :  { %704 = vrot.lane.b32.xlu1 %v1856_v55, %s1137_s18 }
 0x419   :  { %p1117_p4 = pnand %p1116_p3, %p1110_p0 }
 0x41c   :  { %688 = vrot.lane.b32.xlu1 %v1856_v55, %s1138_s19 }
 0x44a   :  { %v787_v12 = vpop.permute.xlu1 %786  ;;  %v769_v20 = vpop.permute.xlu0 %768 }
 0x44e   :  { %v789_v6 = vpop.permute.xlu1 %788  ;;  %v757_v10 = vpop.permute.xlu0 %756 }
 0x44f   :  { %v793_v15 = vsel %vm2237_vm5, %v787_v12, %v789_v6  ;;  %vm2240_vm5 = vmmov %vm2239_vm6 }
 0x450   :  { %1048 = vmatprep.subr.msk.mxu0 %vm1345_vm11, %v793_v15  ;;  %vm2241_vm11 = vcmp.lt.s32.totalorder %v1332_v48, 113 }
 0x452   :  { %v753_v14 = vpop.permute.xlu0 %752  ;;  %v785_v4 = vpop.permute.xlu1 %784 }
 0x453   :  { %v794_v25 = vsel %vm2238_vm7, %v785_v4, %v787_v12  ;;  %vm2243_vm7 = vnez %v2150_v17 }
 0x454   :  { %1049 = vmatpush1.msk.msra.mxu0 %vm1363_vm13, %v794_v25  ;;  %vm2242_vm13 = vmmov %vm2241_vm11 }
 0x456   :  { %v741_v28 = vpop.permute.xlu0 %740  ;;  %v771_v42 = vpop.permute.xlu1 %770 }
 0x457   :  { %v778_v40 = vsel %vm2240_vm5, %v769_v20, %v771_v42  ;;  %vm2247_vm5 = vnez %v2154_v27 }
 0x45a   :  { %v737_v50 = vpop.permute.xlu0 %736  ;;  %v773_v36 = vpop.permute.xlu1 %772 }
 0x45b   :  { %v777_v11 = vsel %vm2239_vm6, %v771_v42, %v773_v36  ;;  %vm2244_vm6 = vnez %v2152_v21 }
 0x45c   :  { %1050 = vmatprep.subr.msk.mxu0 %vm1391_vm12, %v777_v11  ;;  %vm2245_vm12 = vcmp.lt.s32.totalorder %v1332_v48, 111 }
 0x45d   :  { %1051 = vmatpush1.msk.msra.mxu0 %vm1417_vm1, %v778_v40  ;;  %vm2246_vm1 = vmmov %vm2245_vm12 }
 0x45e   :  { %v717_v51 = vpop.permute.xlu0 %716  ;;  %v755_v45 = vpop.permute.xlu1 %754 }
 0x45f   :  { %v761_v57 = vsel %vm2241_vm11, %v755_v45, %v757_v10  ;;  %v762_v43 = vsel %vm2242_vm13, %v753_v14, %v755_v45  ;;  %vm2248_vm11 = vnez %v2156_v31  ;;  %vm2249_vm13 = vcmp.lt.s32.totalorder %v1332_v48, 127 }
 0x460   :  { %1052 = vmatprep.subr.msk.mxu0 %vm2243_vm7, %v761_v57  ;;  %vm2250_vm7 = vmmov %vm2249_vm13 }
 0x461   :  { %1053 = vmatpush1.msk.msra.mxu0 %vm2244_vm6, %v762_v43  ;;  %vm2251_vm6 = vnez %v2158_v39 }
 0x462   :  { %v743_v54 = vpop.permute.xlu0 %742  ;;  %v791_v1 = vpop.permute.xlu1 %790 }
 0x463   :  { %v792_v8 = vsel %vm2245_vm12, %v789_v6, %v791_v1  ;;  %v795_v2 = vsel %vm2246_vm1, %v791_v1, %v785_v4  ;;  %vm2252_vm12 = vnez %v2160_v52  ;;  %vm2253_vm1 = vnez %v2162_v59  ;;  %v667_v6 = vld [vmem:[%s2095_s9] sm:$0xff] }
 0x464   :  { %1067 = vmatprep.subr.msk.mxu1 %vm2247_vm5, %v795_v2  ;;  %vm2254_vm5 = vcmp.lt.s32.totalorder %v1332_v48, 112 }
 0x465   :  { %1068 = vmatpush1.msk.msra.mxu1 %vm2248_vm11, %v792_v8  ;;  %vm2255_vm11 = vmmov %vm2254_vm5 }
 0x466   :  { %v739_v3 = vpop.permute.xlu1 %738  ;;  %v701_v47 = vpop.permute.xlu0 %700 }
 0x467   :  { %v745_v17 = vsel %vm2249_vm13, %v739_v3, %v741_v28  ;;  %v746_v21 = vsel %vm2250_vm7, %v737_v50, %v739_v3  ;;  %vm2256_vm13 = vnez %v2165_v60  ;;  %vm2257_vm7 = vnez %v2167_v62  ;;  %v963_v3 = vld [vmem:[%s2096_s10] sm:$0xff] }
 0x468   :  { %1054 = vmatprep.subr.msk.mxu0 %vm2251_vm6, %v745_v17  ;;  %vm2258_vm6 = vnez %v2171_v7 }
 0x469   :  { %1055 = vmatpush1.msk.msra.mxu0 %vm2252_vm12, %v746_v21  ;;  %vm2259_vm12 = vcmp.lt.s32.totalorder %v1332_v48, 113 }
 0x46a   :  { %1056 = vmatprep.subr.msk.mxu0 %vm2253_vm1, %v1850_v53  ;;  %v775_v27 = vpop.permute.xlu1 %774  ;;  %v707_v39 = vpop.permute.xlu0 %706  ;;  %vm2260_vm1 = vmmov %vm2259_vm12 }
 0x46b   :  { %v776_v31 = vsel %vm2254_vm5, %v773_v36, %v775_v27  ;;  %v779_v13 = vsel %vm2255_vm11, %v775_v27, %v769_v20  ;;  %1057 = vmatpush1.msk.msra.mxu0 %vm2256_vm13, %v1848_v38  ;;  %vm2261_vm5 = vcmp.lt.s32.totalorder %v1332_v48, 127  ;;  %vm2262_vm11 = vnez %v2178_v23 }
 0x46c   :  { %1069 = vmatprep.subr.msk.mxu1 %vm2257_vm7, %v779_v13  ;;  %v747_v60 = vsel %vm2261_vm5, %v743_v54, %v737_v50  ;;  %vm2263_vm13 = vmmov %vm2261_vm5  ;;  %vm2264_vm7 = vcmp.lt.s32.totalorder %v1332_v48, 1  ;;  %vm2272_vm5 = vcmp.lt.s32.totalorder %v1332_v48, 16 }
 0x46d   :  { %1070 = vmatpush1.msk.msra.mxu1 %vm2258_vm6, %v776_v31  ;;  %v744_v62 = vsel %vm2263_vm13, %v741_v28, %v743_v54  ;;  %vm2266_vm6 = vnez %v2194_v41  ;;  %vm2274_vm13 = vnez %v2205_v9 }
 0x46e   :  { %v759_v52 = vpop.permute.xlu1 %758  ;;  %v687_v5 = vpop.permute.xlu0 %686 }
 0x46f   :  { %v760_v59 = vsel %vm2259_vm12, %v757_v10, %v759_v52  ;;  %v763_v53 = vsel %vm2260_vm1, %v759_v52, %v753_v14  ;;  %vm2268_vm12 = vnez %v2197_v29  ;;  %vm2271_vm1 = vnez %v2202_v19 }
 0x470   :  { %1071 = vmatprep.subr.msk.mxu1 %vm1583_vm3, %v763_v53  ;;  %vm2265_vm3 = vnez %v2191_v63 }
 0x471   :  { %1072 = vmatpush1.msk.msra.mxu1 %vm2262_vm11, %v760_v59  ;;  %vm2273_vm11 = vmmov %vm2272_vm5 }
 0x472   :  { %1073 = vmatprep.subr.msk.mxu1 %vm1605_vm0, %v747_v60  ;;  %v719_v7 = vpop.permute.xlu1 %718  ;;  %vm2267_vm0 = vmmov %vm2264_vm7  ;;  %v691_v26 = vpop.permute.xlu0 %690 }
 0x473   :  { %v726_v38 = vsel %vm2264_vm7, %v717_v51, %v719_v7  ;;  %1074 = vmatpush1.msk.msra.mxu1 %vm1614_vm10, %v744_v62  ;;  %vm2269_vm10 = vcmp.lt.s32.totalorder %v1332_v48, 15  ;;  %vm2275_vm7 = vnez %v2207_v18 }
 0x474   :  { %1058 = vmatprep.subr.msk.mxu0 %vm1628_vm4, %v726_v38  ;;  %1075 = vmatprep.subr.msk.mxu1 %vm2265_vm3, %v1878_v61  ;;  %vm2270_vm4 = vmmov %vm2269_vm10 }
 0x475   :  { %1076 = vmatpush1.msk.msra.mxu1 %vm2266_vm6, %v1856_v55  ;;  %v711_v63 = vsel %vm2270_vm4, %v707_v39, %v701_v47  ;;  %vm2277_vm3 = vmmov %vm2267_vm0  ;;  %vm2278_vm6 = vnez %v2209_v22  ;;  %vm2282_vm4 = vnez %v2215_v46 }
 0x476   :  { %v723_v23 = vpop.permute.xlu1 %722  ;;  %v671_v16 = vpop.permute.xlu0 %670 }
 0x477   :  { %v727_v30 = vsel %vm2267_vm0, %v723_v23, %v717_v51 }
 0x478   :  { %1059 = vmatpush1.msk.msra.mxu0 %vm2268_vm12, %v727_v30  ;;  %vm2280_vm12 = vcmp.lt.s32.totalorder %v1332_v48, 17 }
 0x47a   :  { %v703_v34 = vpop.permute.xlu1 %702  ;;  %v675_v12 = vpop.permute.xlu0 %674 }
 0x47b   :  { %v710_v58 = vsel %vm2269_vm10, %v701_v47, %v703_v34  ;;  %vm2281_vm10 = vmmov %vm2280_vm12  ;;  %v967_v47 = vld [vmem:[%s2097_s11] sm:$0xff] }
 0x47c   :  { %1060 = vmatprep.subr.msk.mxu0 %vm1689_vm14, %v710_v58  ;;  %vm2276_vm14 = vmmov %vm2267_vm0  ;;  %vm2279_vm0 = vnez %v2211_v24  ;;  %v1107_v58 = vld [vmem:[%s2086_s0 + $0x10] sm:$0xff] }
 0x47d   :  { %1061 = vmatpush1.msk.msra.mxu0 %vm2271_vm1, %v711_v63  ;;  %vm2283_vm1 = vnez %v2217_v44 }
 0x47e   :  { %v685_v41 = vpop.permute.xlu1 %684  ;;  %v673_v46 = vpop.permute.xlu0 %672 }
 0x47f   :  { %v694_v55 = vsel %vm2272_vm5, %v685_v41, %v687_v5  ;;  %v695_v29 = vsel %vm2273_vm11, %v691_v26, %v685_v41  ;;  %vm2284_vm5 = vcmask 588800   ;;  %vm2285_vm11 = vcmp.lt.s32.totalorder %v1332_v48, 15  ;;  %v1108_v41 = vld [vmem:[%s2086_s0 + $0x18] sm:$0xff] }
 0x480   :  { %1062 = vmatprep.subr.msk.mxu0 %vm2274_vm13, %v694_v55  ;;  %vm2286_vm13 = vmmov %vm2285_vm11 }
 0x481   :  { %1063 = vmatpush1.msk.msra.mxu0 %vm2275_vm7, %v695_v29  ;;  %vm2287_vm7 = vnez %v2219_v37 }
 0x482   :  { %v721_v61 = vpop.permute.xlu1 %720 }
 0x483   :  { %v724_v33 = vsel %vm2276_vm14, %v721_v61, %v723_v23  ;;  %v725_v19 = vsel %vm2277_vm3, %v719_v7, %v721_v61  ;;  %vm2288_vm14 = vnez %v2221_v0  ;;  %vm2289_vm3 = vcmp.lt.s32.totalorder %v1332_v48, 16  ;;  %v1105_v23 = vld [vmem:[%s2086_s0] sm:$0xff] }
 0x484   :  { %1077 = vmatprep.subr.msk.mxu1 %vm2278_vm6, %v724_v33  ;;  %vm2290_vm6 = vmmov %vm2289_vm3 }
 0x485   :  { %1078 = vmatpush1.msk.msra.mxu1 %vm2279_vm0, %v725_v19  ;;  %vm2291_vm0 = vmmov %vm2281_vm10 }
 0x486   :  { %v669_v20 = vpop.permute.xlu1 %668  ;;  %v676_v4 = vsel %vm2291_vm0, %v673_v46, %v675_v12 }
 0x487   :  { %v678_v9 = vsel %vm2280_vm12, %v669_v20, %v671_v16  ;;  %v679_v18 = vsel %vm2281_vm10, %v675_v12, %v669_v20  ;;  %vm2292_vm12 = vmmov %vm2291_vm0 }
 0x488   :  { %1064 = vmatprep.subr.msk.mxu0 %vm2282_vm4, %v678_v9  ;;  %v677_v37 = vsel %vm2292_vm12, %v671_v16, %v673_v46  ;;  %vm2293_vm10 = vmmov %vm2284_vm5 }
 0x489   :  { %1065 = vmatpush1.msk.msra.mxu0 %vm2283_vm1, %v679_v18 }
 0x48a   :  { %v705_v22 = vpop.permute.xlu1 %704  ;;  %1066 = vmatmul.mubr.msk.f32.vlgmr.msra.gmra.mxu0 %vm2284_vm5, %v667_v6 }
 0x48b   :  { %v708_v24 = vsel %vm2285_vm11, %v705_v22, %v707_v39  ;;  %v709_v10 = vsel %vm2286_vm13, %v703_v34, %v705_v22 }
 0x48c   :  { %1079 = vmatprep.subr.msk.mxu1 %vm2287_vm7, %v708_v24 }
 0x48d   :  { %1080 = vmatpush1.msk.msra.mxu1 %vm2288_vm14, %v709_v10 }
 0x48e   :  { %v689_v15 = vpop.permute.xlu1 %688 }
 0x48f   :  { %v692_v44 = vsel %vm2289_vm3, %v689_v15, %v691_v26  ;;  %v693_v14 = vsel %vm2290_vm6, %v687_v5, %v689_v15  ;;  %v1106_v26 = vld [vmem:[%s2086_s0 + $0x8] sm:$0xff] }
 0x490   :  { %1081 = vmatprep.subr.msk.mxu1 %vm1804_vm15, %v692_v44 }
 0x491   :  { %1082 = vmatpush1.msk.msra.mxu1 %vm1808_vm8, %v693_v14 }
 0x492   :  { %1083 = vmatprep.subr.msk.mxu1 %vm1817_vm2, %v676_v4 }
 0x493   :  { %1084 = vmatpush1.msk.msra.mxu1 %vm1823_vm9, %v677_v37 }
 0x494   :  { %1085 = vmatmul.mubr.msk.f32.vlgmr.msra.gmra.mxu1 %vm2293_vm10, %v667_v6 }
 0x54a   :  { %v869_v0 = vpop.f32.mrf.mxu0 }
 0x54b   :  { %v950_v25 = vmul.f32 %v869_v0, %v869_v0 }
 0x54c   :  { %v871_v49 = vpop.f32.mrf.mxu0 }
 0x54d   :  { %v951_v28 = vmul.f32 %v871_v49, %v871_v49  ;;  %v945_v42 = vadd.f32 %v871_v49, %v869_v0 }
 0x54f   :  { %v954_v36 = vadd.f32 %v951_v28, %v950_v25 }
 0x554   :  { %v940_v50 = vpop.f32.mrf.mxu1 }
 0x555   :  { %v952_v56 = vmul.f32 %v940_v50, %v940_v50  ;;  %v946_v11 = vadd.f32 %v945_v42, %v940_v50 }
 0x556   :  { %v942_v40 = vpop.f32.mrf.mxu1 }
 0x557   :  { %v953_v48 = vmul.f32 %v942_v40, %v942_v40  ;;  %v947_v51 = vadd.f32 %v946_v11, %v942_v40  ;;  %v955_v45 = vadd.f32 %v954_v36, %v952_v56 }
 0x559   :  { %948 = vadd.xlane.f32.xlu1 %v947_v51  ;;  %v956_v32 = vadd.f32 %v955_v45, %v953_v48 }
 0x55b   :  { %957 = vadd.xlane.f32.xlu0 %v956_v32 }
 0x5e2   :  { %v949_v35 = vpop.xlane.xlu1 %948 }
 0x5e3   :  { %v959_v57 = vmul.f32 0.001953125, %v949_v35 }
 0x5e4   :  { %v958_v43 = vpop.xlane.xlu0 %957 }
 0x5e5   :  { %v961_v54 = vmul.f32 %v959_v57, %v959_v57  ;;  %v960_v1 = vmul.f32 0.001953125, %v958_v43 }
 0x5e7   :  { %v962_v8 = vsub.f32 %v960_v1, %v961_v54 }
 0x5e9   :  { %v964_v2 = vadd.f32 2e-05, %v962_v8 }
 0x5eb   :  { %1103 = vrsqrt.f32 %v964_v2 }
 0x5f8   :  { %v1104_v17 = vpop.eup %1103 }
 0x5f9   :  { %v966_v21 = vmul.f32 %v1104_v17, %v963_v3 }
 0x5fb   :  { %972 = vperm.xlu0 %1098, %v966_v21   ;;  %v968_v27 = vmul.f32 %v966_v21, %v959_v57 }
 0x5fd   :  { %v969_v31 = vsub.f32 %v967_v47, %v968_v27 }
 0x5ff   :  { %981 = vperm.xlu1 %1097, %v969_v31  }
 0x676   :  { %v973_v13 = vpop.permute.xlu0 %972 }
 0x677   :  { %v975_v39 = vmul.f32 %v973_v13, %v869_v0  ;;  %v976_v52 = vmul.f32 %v973_v13, %v871_v49  ;;  %v977_v59 = vmul.f32 %v973_v13, %v940_v50  ;;  %v978_v53 = vmul.f32 %v973_v13, %v942_v40 }
 0x67a   :  { %v982_v60 = vpop.permute.xlu1 %981 }
 0x67b   :  { %v984_v62 = vadd.f32 %v982_v60, %v975_v39  ;;  %v985_v7 = vadd.f32 %v982_v60, %v976_v52  ;;  %v986_v38 = vadd.f32 %v982_v60, %v977_v59  ;;  %v987_v5 = vadd.f32 %v982_v60, %v978_v53 }
 0x67d   :  { %v988_v30 = vadd.f32 %v1105_v23, %v984_v62  ;;  %v989_v34 = vadd.f32 %v1106_v26, %v985_v7  ;;  %v990_v63 = vadd.f32 %v1107_v58, %v986_v38  ;;  %v991_v55 = vadd.f32 %v1108_v41, %v987_v5 }
 0x67f   :  { %992 = vst [vmem:[#allocation2] sm:$0xff] %v988_v30  ;;  %993 = vst [vmem:[#allocation2 + $0x8] sm:$0xff] %v989_v34 }
 0x680   :  { %994 = vst [vmem:[#allocation2 + $0x10] sm:$0xff] %v990_v63  ;;  %995 = vst [vmem:[#allocation2 + $0x18] sm:$0xff] %v991_v55 }
 0x681   :  { %1120 = shalt.err (!%p1117_p4)
}
 0x682   :  { %1005 = dma.vmem_to_hbm [thread:$0]  %s1003_s3, 512, %s2098_s12, [#allocation3]  }
 0x683   :  { %1129 = dma.done.wait [#allocation3], 512  }
 0x684   :  { %1130 = vsyncadd [#allocation3], 4294966784 }
 0x685   :  { %1009 = vsyncpa [#allocation3], 1 }

</bundles_post_ra>
